<compile_context>
chip_gen: v6e
topology: v6e:2x2x1
jax: 0.10.0
libtpu: 0.0.40
codegen_flags: <defaults>
</compile_context>

<pallas_src>
import functools

import jax
import jax.numpy as jnp
from jax.experimental import pallas as pl
from jax.experimental.pallas import tpu as pltpu


# -----------------------------------------------------------------------------
# Fused Pallas kernel: backbone fc + classifier head + softmax + adversarial head
# -----------------------------------------------------------------------------
def _mdd_head_kernel(
    x_ref,                     # (B, flat_dim)           bf16   flattened conv features
    wfc_ref, bfc_ref,          # (flat_dim, Wcls) bf16, (1, Wcls) f32   backbone fc
    whead_ref, bhead_ref,      # (Wcls, npad_cls+256) bf16, (1, .) f32  [classifier | adv-fc1]
    gamma_ref, beta_ref,       # (1, 256) f32                           BatchNorm1d(256)
    wa2_ref, ba2_ref,          # (256, 128) bf16, (1, 128) f32          adv-fc2 (lane padded)
    feat_ref, logits_ref, softmax_ref, adv_ref,
    *, npad_cls,
):
    # ---- backbone fc -> ReLU : this is `features`, fed to both heads ----
    x = x_ref[...]
    feat = jnp.dot(x, wfc_ref[...], preferred_element_type=jnp.float32) + bfc_ref[...]
    feat = jnp.maximum(feat, 0.0)
    feat_ref[...] = feat
    fb = feat.astype(jnp.bfloat16)

    # ---- classifier_layer and classifier_layer_2[0] share the same LHS:
    #      one fused GEMM, then lane-aligned column split ----
    head = jnp.dot(fb, whead_ref[...], preferred_element_type=jnp.float32) + bhead_ref[...]
    logits = head[:, :npad_cls]     # pad lanes carry bias -1e30 (folded softmax mask)
    a = head[:, npad_cls:]          # adversarial hidden, pre-BatchNorm

    logits_ref[...] = logits
    m = jnp.max(logits, axis=1, keepdims=True)
    e = jnp.exp(logits - m)         # pad lanes underflow to exactly 0
    softmax_ref[...] = e / jnp.sum(e, axis=1, keepdims=True)

    # ---- classifier_layer_2: BN(256, batch stats) -> ReLU -> Linear(256, 2) ----
    # GradientReverseLayer is identity in the forward pass.
    mean = jnp.mean(a, axis=0, keepdims=True)
    var = jnp.mean((a - mean) ** 2, axis=0, keepdims=True)
    a = (a - mean) * jax.lax.rsqrt(var + 1e-5)
    a = a * gamma_ref[...] + beta_ref[...]
    a = jnp.maximum(a, 0.0).astype(jnp.bfloat16)
    adv_ref[...] = (
        jnp.dot(a, wa2_ref[...], preferred_element_type=jnp.float32) + ba2_ref[...]
    )


# -----------------------------------------------------------------------------
# Wrapper
# -----------------------------------------------------------------------------
def mddnet_forward(x_nchw, params, class_num):
    """Returns (features, outputs, softmax_outputs, outputs_adv).

    Feed the concatenated source+target batch in one call (as the MDD training
    loop does): the weight DMA and launch cost are amortized, the MXU M dim is
    as large as possible, and BatchNorm1d batch statistics cover the full
    concatenated batch, matching the PyTorch reference.
    """
    B = x_nchw.shape[0]

    # --- synthetic DigitFeatures backbone convs (tiny; handled by XLA) -------
    # TODO(synk): backbone.DigitFeatures is not defined in the source; a small
    # two-conv digit CNN stands in so the feature dim equals classifier_width.
    x = jnp.transpose(x_nchw, (0, 2, 3, 1)).astype(jnp.float32)   # NHWC
    h = jax.lax.conv_general_dilated(
        x, params["conv1_w"], (2, 2), [(1, 1), (1, 1)],
        dimension_numbers=("NHWC", "HWIO", "NHWC")) + params["conv1_b"]
    h = jnp.maximum(h, 0.0)
    h = jax.lax.conv_general_dilated(
        h, params["conv2_w"], (2, 2), [(1, 1), (1, 1)],
        dimension_numbers=("NHWC", "HWIO", "NHWC")) + params["conv2_b"]
    h = jnp.maximum(h, 0.0)
    h_flat = h.reshape(B, -1).astype(jnp.bfloat16)   # bf16 kernel input

    classifier_width = params["wfc"].shape[1]
    adv_hidden = params["gamma"].shape[1]                 # 256
    npad_cls = params["whead"].shape[1] - adv_hidden      # class_num padded to 128 lanes
    npad_adv = params["wa2"].shape[1]                     # 2 padded to 128 lanes

    kernel = functools.partial(_mdd_head_kernel, npad_cls=npad_cls)
    vmem = pl.BlockSpec(memory_space=pltpu.MemorySpace.VMEM)
    out_shapes = (
        jax.ShapeDtypeStruct((B, classifier_width), jnp.float32),   # features
        jax.ShapeDtypeStruct((B, npad_cls), jnp.float32),           # logits (padded)
        jax.ShapeDtypeStruct((B, npad_cls), jnp.float32),           # softmax (padded)
        jax.ShapeDtypeStruct((B, npad_adv), jnp.float32),           # adv (padded)
    )
    # TODO(synk): for a real training loop, persist the ~1.9 MB of head weights
    # in VMEM across steps via a cross-call DMA future (P10) instead of
    # re-DMAing every call, and consider int8 (v5e/v6e) / fp8 (v7x) weight
    # quantization of wfc/whead gated on pltpu.get_tpu_info().
    # NOTE(v7x): grid=() runs on one TensorCore.  Splitting the batch across
    # both cores would silently turn the in-kernel BatchNorm into per-tile
    # statistics, so a batch grid axis needs a cross-tile mean/var reduction
    # first; at small B it is pure overhead anyway.
    feat, logits_p, sm_p, adv_p = pl.pallas_call(
        kernel,
        out_shape=out_shapes,
        in_specs=[vmem] * 9,
        out_specs=(vmem, vmem, vmem, vmem),
        compiler_params=pltpu.CompilerParams(vmem_limit_bytes=8 * 1024 * 1024),
    )(
        h_flat,
        params["wfc"], params["bfc"],
        params["whead"], params["bhead"],
        params["gamma"], params["beta"],
        params["wa2"], params["ba2"],
    )
    return feat, logits_p[:, :class_num], sm_p[:, :class_num], adv_p[:, :2]


# -----------------------------------------------------------------------------
# Parameter construction (runs once, outside the hot path)
# -----------------------------------------------------------------------------
def _xavier_normal(key, shape_out_in):
    fan_out, fan_in = shape_out_in
    std = (2.0 / (fan_in + fan_out)) ** 0.5
    return jax.random.normal(key, shape_out_in, dtype=jnp.float32) * std


def make_params(key, in_ch, class_num, classifier_width, H=16, W=16):
    ks = jax.random.split(key, 6)

    # --- synthetic DigitFeatures backbone: two 3x3/s2 convs + fc, all ReLU ---
    conv1_w = jax.random.normal(ks[0], (3, 3, in_ch, 16), jnp.float32) * 0.05
    conv1_b = jnp.full((16,), 0.1, jnp.float32)
    conv2_w = jax.random.normal(ks[1], (3, 3, 16, 32), jnp.float32) * 0.05
    conv2_b = jnp.full((32,), 0.1, jnp.float32)
    oh1, ow1 = (H + 2 - 3) // 2 + 1, (W + 2 - 3) // 2 + 1
    oh2, ow2 = (oh1 + 2 - 3) // 2 + 1, (ow1 + 2 - 3) // 2 + 1
    flat_dim = oh2 * ow2 * 32

    fc_w = jax.random.normal(ks[2], (flat_dim, classifier_width), jnp.float32) * 0.01
    fc_b = jnp.zeros((classifier_width,), jnp.float32)

    # --- classifier_layer: Linear(classifier_width, class_num), xavier, bias 0 ---
    cls_w = _xavier_normal(ks[3], (class_num, classifier_width)).T   # (Wcls, class_num)
    # --- classifier_layer_2: Linear(W,256) -> BN(256) -> ReLU -> Linear(256,2) ---
    adv_w1 = _xavier_normal(ks[4], (256, classifier_width)).T        # (Wcls, 256)
    adv_b1 = jnp.zeros((256,), jnp.float32)
    bn_gamma = jnp.ones((256,), jnp.float32)
    bn_beta = jnp.zeros((256,), jnp.float32)
    adv_w2 = _xavier_normal(ks[5], (2, 256)).T                       # (256, 2)
    adv_b2 = jnp.zeros((2,), jnp.float32)

    # --- lane-dense padding; softmax pad-mask folded into the bias (-1e30) ---
    npad_cls = ((class_num + 127) // 128) * 128
    cls_w_pad = (
        jnp.zeros((classifier_width, npad_cls), jnp.float32).at[:, :class_num].set(cls_w)
    )
    cls_b_pad = jnp.full((npad_cls,), -1e30, jnp.float32).at[:class_num].set(0.0)
    # fused head weight: [classifier_layer | classifier_layer_2[0]]
    whead = jnp.concatenate([cls_w_pad, adv_w1], axis=1)             # (Wcls, npad_cls+256)
    bhead = jnp.concatenate([cls_b_pad, adv_b1])
    adv_w2_pad = jnp.zeros((256, 128), jnp.float32).at[:, :2].set(adv_w2)
    adv_b2_pad = jnp.zeros((128,), jnp.float32).at[:2].set(adv_b2)

    return {
        # conv weights stay f32 HWIO; used by lax.conv in the wrapper (tiny)
        "conv1_w": conv1_w, "conv1_b": conv1_b,
        "conv2_w": conv2_w, "conv2_b": conv2_b,
        # Pallas-kernel weights: bf16 matmul operands, f32 (1, N) biases
        "wfc": fc_w.astype(jnp.bfloat16),        "bfc": fc_b.reshape(1, -1),
        "whead": whead.astype(jnp.bfloat16),     "bhead": bhead.reshape(1, -1),
        "gamma": bn_gamma.reshape(1, -1),        "beta": bn_beta.reshape(1, -1),
        "wa2": adv_w2_pad.astype(jnp.bfloat16),  "ba2": adv_b2_pad.reshape(1, -1),
    }


# -----------------------------------------------------------------------------
if __name__ == "__main__":
    CLASS_NUM = 31            # module default
    CLASSIFIER_WIDTH = 1024   # module default (== feature dim fed to the heads)
    C, H, W = 3, 16, 16
    B_SRC = B_TGT = 4         # MDD feeds source + target through the same head

    key = jax.random.PRNGKey(0)
    k_s, k_t, k_p = jax.random.split(key, 3)
    x_src = jax.random.normal(k_s, (B_SRC, C, H, W), dtype=jnp.float32)  # NCHW
    x_tgt = jax.random.normal(k_t, (B_TGT, C, H, W), dtype=jnp.float32)
    # One call for the concatenated batch: amortizes weight DMA / launch cost
    # and keeps BatchNorm batch statistics over the full MDD batch.
    x = jnp.concatenate([x_src, x_tgt], axis=0)
    B = x.shape[0]

    params = make_params(k_p, C, CLASS_NUM, CLASSIFIER_WIDTH, H, W)

    fwd = jax.jit(functools.partial(mddnet_forward, class_num=CLASS_NUM))
    features, outputs, softmax_outputs, outputs_adv = fwd(x, params)
    jax.block_until_ready((features, outputs, softmax_outputs, outputs_adv))

    assert features.shape == (B, CLASSIFIER_WIDTH)
    assert outputs.shape == (B, CLASS_NUM)
    assert softmax_outputs.shape == (B, CLASS_NUM)
    assert outputs_adv.shape == (B, 2)
    # exact-divide softmax: rows sum to 1 within f32 rounding
    assert jnp.allclose(jnp.sum(softmax_outputs, axis=1), 1.0, atol=1e-3)
    assert jnp.all(jnp.isfinite(features))
    assert jnp.all(jnp.isfinite(outputs))
    assert jnp.all(jnp.isfinite(outputs_adv))

    print("KERNEL_OK")
</pallas_src>

<mosaic_0001>
module attributes {stable_mosaic.version = 11 : i64} {
  func.func @_mdd_head_kernel(%arg0: memref<8x512xbf16, #tpu.memory_space<vmem>>, %arg1: memref<512x1024xbf16, #tpu.memory_space<vmem>>, %arg2: memref<1x1024xf32, #tpu.memory_space<vmem>>, %arg3: memref<1024x384xbf16, #tpu.memory_space<vmem>>, %arg4: memref<1x384xf32, #tpu.memory_space<vmem>>, %arg5: memref<1x256xf32, #tpu.memory_space<vmem>>, %arg6: memref<1x256xf32, #tpu.memory_space<vmem>>, %arg7: memref<256x128xbf16, #tpu.memory_space<vmem>>, %arg8: memref<1x128xf32, #tpu.memory_space<vmem>>, %arg9: memref<8x1024xf32, #tpu.memory_space<vmem>>, %arg10: memref<8x128xf32, #tpu.memory_space<vmem>>, %arg11: memref<8x128xf32, #tpu.memory_space<vmem>>, %arg12: memref<8x128xf32, #tpu.memory_space<vmem>>) attributes {dimension_semantics = [], scalar_prefetch = 0 : i64, scratch_operands = 0 : i64, tpu.core_type = #tpu.core_type<tc>} {
    %c0 = arith.constant 0 : index
    %c0_0 = arith.constant 0 : index
    %0 = vector.load %arg0[%c0, %c0_0] : memref<8x512xbf16, #tpu.memory_space<vmem>>, vector<8x512xbf16>
    %c0_1 = arith.constant 0 : index
    %c0_2 = arith.constant 0 : index
    %1 = vector.load %arg1[%c0_1, %c0_2] : memref<512x1024xbf16, #tpu.memory_space<vmem>>, vector<512x1024xbf16>
    %cst = arith.constant dense<0.000000e+00> : vector<8x1024xf32>
    %2 = tpu.matmul %0, %1, %cst {dimension_numbers = #tpu.dot_dimension_numbers<[1], [0], [0], [1], [0, 0, 1, 1], [], []>} : vector<8x512xbf16>, vector<512x1024xbf16>, vector<8x1024xf32> -> vector<8x1024xf32>
    %c0_3 = arith.constant 0 : index
    %c0_4 = arith.constant 0 : index
    %3 = vector.load %arg2[%c0_3, %c0_4] : memref<1x1024xf32, #tpu.memory_space<vmem>>, vector<1x1024xf32>
    %4 = vector.broadcast %3 : vector<1x1024xf32> to vector<8x1024xf32>
    %5 = arith.addf %2, %4 : vector<8x1024xf32>
    %cst_5 = arith.constant 0.000000e+00 : f32
    %6 = vector.broadcast %cst_5 : f32 to vector<8x1024xf32>
    %7 = arith.maximumf %5, %6 : vector<8x1024xf32>
    %c0_6 = arith.constant 0 : index
    %c0_7 = arith.constant 0 : index
    %8 = vector.load %arg9[%c0_6, %c0_7] : memref<8x1024xf32, #tpu.memory_space<vmem>>, vector<8x1024xf32>
    tpu.vector_store %arg9[%c0_6, %c0_7], %7 {strides = array<i32>} : memref<8x1024xf32, #tpu.memory_space<vmem>>, vector<8x1024xf32>,
    %9 = arith.truncf %7 : vector<8x1024xf32> to vector<8x1024xbf16>
    %c0_8 = arith.constant 0 : index
    %c0_9 = arith.constant 0 : index
    %10 = vector.load %arg3[%c0_8, %c0_9] : memref<1024x384xbf16, #tpu.memory_space<vmem>>, vector<1024x384xbf16>
    %cst_10 = arith.constant dense<0.000000e+00> : vector<8x384xf32>
    %11 = tpu.matmul %9, %10, %cst_10 {dimension_numbers = #tpu.dot_dimension_numbers<[1], [0], [0], [1], [0, 0, 1, 1], [], []>} : vector<8x1024xbf16>, vector<1024x384xbf16>, vector<8x384xf32> -> vector<8x384xf32>
    %c0_11 = arith.constant 0 : index
    %c0_12 = arith.constant 0 : index
    %12 = vector.load %arg4[%c0_11, %c0_12] : memref<1x384xf32, #tpu.memory_space<vmem>>, vector<1x384xf32>
    %13 = vector.broadcast %12 : vector<1x384xf32> to vector<8x384xf32>
    %14 = arith.addf %11, %13 : vector<8x384xf32>
    %15 = vector.extract_strided_slice %14 {offsets = [0, 0], sizes = [8, 128], strides = [1, 1]} : vector<8x384xf32> to vector<8x128xf32>
    %16 = vector.extract_strided_slice %14 {offsets = [0, 128], sizes = [8, 256], strides = [1, 1]} : vector<8x384xf32> to vector<8x256xf32>
    %c0_13 = arith.constant 0 : index
    %c0_14 = arith.constant 0 : index
    %17 = vector.load %arg10[%c0_13, %c0_14] : memref<8x128xf32, #tpu.memory_space<vmem>>, vector<8x128xf32>
    tpu.vector_store %arg10[%c0_13, %c0_14], %15 {strides = array<i32>} : memref<8x128xf32, #tpu.memory_space<vmem>>, vector<8x128xf32>,
    %cst_15 = arith.constant dense<0xFF800000> : vector<8xf32>
    %18 = vector.multi_reduction <maximumf>, %15, %cst_15 [1] : vector<8x128xf32> to vector<8xf32>
    %19 = vector.shape_cast %18 : vector<8xf32> to vector<8x1xf32>
    %20 = vector.broadcast %19 : vector<8x1xf32> to vector<8x128xf32>
    %21 = arith.subf %15, %20 : vector<8x128xf32>
    %22 = math.exp %21 : vector<8x128xf32>
    %cst_16 = arith.constant dense<0.000000e+00> : vector<8xf32>
    %23 = vector.multi_reduction <add>, %22, %cst_16 [1] : vector<8x128xf32> to vector<8xf32>
    %24 = vector.shape_cast %23 : vector<8xf32> to vector<8x1xf32>
    %25 = vector.broadcast %24 : vector<8x1xf32> to vector<8x128xf32>
    %26 = arith.divf %22, %25 : vector<8x128xf32>
    %c0_17 = arith.constant 0 : index
    %c0_18 = arith.constant 0 : index
    %27 = vector.load %arg11[%c0_17, %c0_18] : memref<8x128xf32, #tpu.memory_space<vmem>>, vector<8x128xf32>
    tpu.vector_store %arg11[%c0_17, %c0_18], %26 {strides = array<i32>} : memref<8x128xf32, #tpu.memory_space<vmem>>, vector<8x128xf32>,
    %cst_19 = arith.constant dense<0.000000e+00> : vector<256xf32>
    %28 = vector.multi_reduction <add>, %16, %cst_19 [0] : vector<8x256xf32> to vector<256xf32>
    %29 = vector.shape_cast %28 : vector<256xf32> to vector<1x256xf32>
    %cst_20 = arith.constant 8.000000e+00 : f32
    %30 = vector.broadcast %cst_20 : f32 to vector<1x256xf32>
    %31 = arith.divf %29, %30 : vector<1x256xf32>
    %32 = vector.broadcast %31 : vector<1x256xf32> to vector<8x256xf32>
    %33 = arith.subf %16, %32 : vector<8x256xf32>
    %34 = arith.mulf %33, %33 : vector<8x256xf32>
    %cst_21 = arith.constant dense<0.000000e+00> : vector<256xf32>
    %35 = vector.multi_reduction <add>, %34, %cst_21 [0] : vector<8x256xf32> to vector<256xf32>
    %36 = vector.shape_cast %35 : vector<256xf32> to vector<1x256xf32>
    %cst_22 = arith.constant 8.000000e+00 : f32
    %37 = vector.broadcast %cst_22 : f32 to vector<1x256xf32>
    %38 = arith.divf %36, %37 : vector<1x256xf32>
    %39 = vector.broadcast %31 : vector<1x256xf32> to vector<8x256xf32>
    %40 = arith.subf %16, %39 : vector<8x256xf32>
    %cst_23 = arith.constant 9.99999974E-6 : f32
    %41 = vector.broadcast %cst_23 : f32 to vector<1x256xf32>
    %42 = arith.addf %38, %41 : vector<1x256xf32>
    %43 = math.rsqrt %42 : vector<1x256xf32>
    %44 = vector.broadcast %43 : vector<1x256xf32> to vector<8x256xf32>
    %45 = arith.mulf %40, %44 : vector<8x256xf32>
    %c0_24 = arith.constant 0 : index
    %c0_25 = arith.constant 0 : index
    %46 = vector.load %arg5[%c0_24, %c0_25] : memref<1x256xf32, #tpu.memory_space<vmem>>, vector<1x256xf32>
    %47 = vector.broadcast %46 : vector<1x256xf32> to vector<8x256xf32>
    %48 = arith.mulf %45, %47 : vector<8x256xf32>
    %c0_26 = arith.constant 0 : index
    %c0_27 = arith.constant 0 : index
    %49 = vector.load %arg6[%c0_26, %c0_27] : memref<1x256xf32, #tpu.memory_space<vmem>>, vector<1x256xf32>
    %50 = vector.broadcast %49 : vector<1x256xf32> to vector<8x256xf32>
    %51 = arith.addf %48, %50 : vector<8x256xf32>
    %cst_28 = arith.constant 0.000000e+00 : f32
    %52 = vector.broadcast %cst_28 : f32 to vector<8x256xf32>
    %53 = arith.maximumf %51, %52 : vector<8x256xf32>
    %54 = arith.truncf %53 : vector<8x256xf32> to vector<8x256xbf16>
    %c0_29 = arith.constant 0 : index
    %c0_30 = arith.constant 0 : index
    %55 = vector.load %arg7[%c0_29, %c0_30] : memref<256x128xbf16, #tpu.memory_space<vmem>>, vector<256x128xbf16>
    %cst_31 = arith.constant dense<0.000000e+00> : vector<8x128xf32>
    %56 = tpu.matmul %54, %55, %cst_31 {dimension_numbers = #tpu.dot_dimension_numbers<[1], [0], [0], [1], [0, 0, 1, 1], [], []>} : vector<8x256xbf16>, vector<256x128xbf16>, vector<8x128xf32> -> vector<8x128xf32>
    %c0_32 = arith.constant 0 : index
    %c0_33 = arith.constant 0 : index
    %57 = vector.load %arg8[%c0_32, %c0_33] : memref<1x128xf32, #tpu.memory_space<vmem>>, vector<1x128xf32>
    %58 = vector.broadcast %57 : vector<1x128xf32> to vector<8x128xf32>
    %59 = arith.addf %56, %58 : vector<8x128xf32>
    %c0_34 = arith.constant 0 : index
    %c0_35 = arith.constant 0 : index
    %60 = vector.load %arg12[%c0_34, %c0_35] : memref<8x128xf32, #tpu.memory_space<vmem>>, vector<8x128xf32>
    tpu.vector_store %arg12[%c0_34, %c0_35], %59 {strides = array<i32>} : memref<8x128xf32, #tpu.memory_space<vmem>>, vector<8x128xf32>,
    return
  }
}

</mosaic_0001>

<bundles_post_ra>
// kernel: mddnet_forward.1
= control target key start
LH: loop header
LB: loop body
LE: loop exit
PB: predicated region body
PF: predicated region fallthrough
CT: control target
= control target key end

     0   :  { %18 = vsyncpa [#allocation3], 0  ;;  %s5913_s0 = inlined_call_operand.vmem [shape: bf16[8,512], index: 0, kind: input, shape index: {}]   ;;  %s5914_s1 = inlined_call_operand.vmem [shape: bf16[512,1024], index: 1, kind: input, shape index: {}]   ;;  %s5915_s2 = inlined_call_operand.vmem [shape: f32[1,1024], index: 2, kind: input, shape index: {}]   ;;  %s5916_s3 = inlined_call_operand.hbm [shape: bf16[1024,384], index: 3, kind: input, shape index: {}]   ;;  %s5917_s4 = inlined_call_operand.vmem [shape: f32[1,384], index: 4, kind: input, shape index: {}]   ;;  %s5918_s5 = inlined_call_operand.vmem [shape: f32[1,256], index: 5, kind: input, shape index: {}]   ;;  %s5919_s6 = inlined_call_operand.vmem [shape: f32[1,256], index: 6, kind: input, shape index: {}]   ;;  %s5920_s7 = inlined_call_operand.vmem [shape: bf16[256,128], index: 7, kind: input, shape index: {}]   ;;  %s5921_s8 = inlined_call_operand.vmem [shape: f32[1,128], index: 8, kind: input, shape index: {}]   ;;  %s5922_s9 = inlined_call_operand.hbm [shape: f32[8,1024], index: 9, kind: output, shape index: {0}]   ;;  %s5923_s10 = inlined_call_operand.hbm [shape: f32[8,128], index: 10, kind: output, shape index: {1}]   ;;  %s5924_s11 = inlined_call_operand.hbm [shape: f32[8,128], index: 11, kind: output, shape index: {2}]   ;;  %s5925_s12 = inlined_call_operand.vmem [shape: f32[8,128], index: 12, kind: output, shape index: {3}]  }
   0x1   :  { %19 = vsyncpa [#allocation4], 0 }
   0x2   :  { %20 = vsyncpa [#allocation7], 0  ;;  %s4879_s21 = smov [#allocation2]  }
   0x3   :  { %s32_s22 = sshll.u32 %s4879_s21, 4  ;;  %s33_s22 = int_to_ptr.vmem [resolvable:$true] %s32_s22 }
   0x4   :  { %s4801_s23 = scalar_lea.vmem %s33_s22, 24576  ;;  %p4806_p1 = scmp.lt.s32.totalorder %s33_s22, %s33_s22 }
   0x5   :  { %p4802_p0 = scmp.ne.s32.totalorder %s33_s22, %s4801_s23  ;;  %p4807_p2 = scmp.lt.s32.totalorder %s4801_s23, %s4801_s23 }
   0x7   :  { %p4808_p3 = por %p4807_p2, %p4806_p1 }
   0x9   :  { %p4809_p4 = pnand %p4808_p3, %p4802_p0 }
   0xb   :  { %4812 = shalt.err (!%p4809_p4)
}
   0xc   :  { %s4880_s24 = smov 192   ;;  %s4881_s25 = smov 12  }
   0xd   :  { %38 = dma.hbm_to_vmem [thread:$0]  %s5916_s3, 24576, %s33_s22, [#allocation3], %s4880_s24, %s4880_s24, %s4881_s25  }
   0xe   :  { %4873 = dma.done.wait [#allocation3], 24576  }
   0xf   :  { %4874 = vsyncadd [#allocation3], 4294942720  ;;  %v111_v0 = vld [vmem:[%s5914_s1 + $0x1c0] sm:$0xff]  ;;  %v5045_v54 = vld [vmem:[%s5913_s0 + $0x8] sm:$0xff]  ;;  %s4883_s20 = smov [#allocation5]  }
  0x10   :  { %v115_v1 = vld [vmem:[%s5914_s1 + $0x1e0] sm:$0xff]  ;;  %v5059_v59 = vcombine.high %v5045_v54, %v5045_v54  ;;  %s3884_s21 = sshll.u32 %s4883_s20, 4  ;;  %s3885_s21 = int_to_ptr.vmem [resolvable:$true] %s3884_s21 }
  0x11   :  { %v239_v2 = vld [vmem:[%s5914_s1 + $0x5c0] sm:$0xff]  ;;  %v3985_v3 = vcombine.high %v111_v0, %v115_v1  ;;  %v3984_v5 = vcombine.low %v111_v0, %v115_v1 }
  0x12   :  { %v243_v4 = vld [vmem:[%s5914_s1 + $0x5e0] sm:$0xff]  ;;  %1720 = vmatprep.mubr.bf16.mxu1 %v5059_v59 }
  0x13   :  { %v103_v6 = vld [vmem:[%s5914_s1 + $0x180] sm:$0xff]  ;;  %v4113_v8 = vcombine.high %v239_v2, %v243_v4  ;;  %v4112_v9 = vcombine.low %v239_v2, %v243_v4  ;;  %1647 = vmatprep.subr.bf16.mxu0 %v3985_v3 }
  0x14   :  { %v107_v7 = vld [vmem:[%s5914_s1 + $0x1a0] sm:$0xff]  ;;  %1648 = vmatpush1.bf16.msra.mxu0 %v3984_v5 }
  0x15   :  { %v3977_v10 = vcombine.high %v103_v6, %v107_v7  ;;  %v231_v11 = vld [vmem:[%s5914_s1 + $0x580] sm:$0xff]  ;;  %1688 = vmatprep.subr.bf16.mxu1 %v4113_v8  ;;  %v3976_v18 = vcombine.low %v103_v6, %v107_v7 }
  0x16   :  { %v235_v12 = vld [vmem:[%s5914_s1 + $0x5a0] sm:$0xff]  ;;  %1689 = vmatpush1.bf16.msra.mxu1 %v4112_v9 }
  0x17   :  { %v95_v13 = vld [vmem:[%s5914_s1 + $0x140] sm:$0xff]  ;;  %v4105_v14 = vcombine.high %v231_v11, %v235_v12  ;;  %1649 = vmatprep.subr.bf16.mxu0 %v3977_v10  ;;  %v4104_v19 = vcombine.low %v231_v11, %v235_v12 }
  0x18   :  { %v99_v15 = vld [vmem:[%s5914_s1 + $0x160] sm:$0xff]  ;;  %1650 = vmatpush1.bf16.msra.mxu0 %v3976_v18 }
  0x19   :  { %v223_v16 = vld [vmem:[%s5914_s1 + $0x540] sm:$0xff]  ;;  %v3969_v20 = vcombine.high %v95_v13, %v99_v15  ;;  %1690 = vmatprep.subr.bf16.mxu1 %v4105_v14  ;;  %v3968_v26 = vcombine.low %v95_v13, %v99_v15 }
  0x1a   :  { %v227_v17 = vld [vmem:[%s5914_s1 + $0x560] sm:$0xff]  ;;  %1691 = vmatpush1.bf16.msra.mxu1 %v4104_v19 }
  0x1b   :  { %v4097_v21 = vcombine.high %v223_v16, %v227_v17  ;;  %v87_v22 = vld [vmem:[%s5914_s1 + $0x100] sm:$0xff]  ;;  %1651 = vmatprep.subr.bf16.mxu0 %v3969_v20  ;;  %v4096_v27 = vcombine.low %v223_v16, %v227_v17 }
  0x1c   :  { %v91_v23 = vld [vmem:[%s5914_s1 + $0x120] sm:$0xff]  ;;  %1652 = vmatpush1.bf16.msra.mxu0 %v3968_v26 }
  0x1d   :  { %v215_v24 = vld [vmem:[%s5914_s1 + $0x500] sm:$0xff]  ;;  %v3961_v28 = vcombine.high %v87_v22, %v91_v23  ;;  %1692 = vmatprep.subr.bf16.mxu1 %v4097_v21  ;;  %v3960_v34 = vcombine.low %v87_v22, %v91_v23 }
  0x1e   :  { %v219_v25 = vld [vmem:[%s5914_s1 + $0x520] sm:$0xff]  ;;  %1693 = vmatpush1.bf16.msra.mxu1 %v4096_v27 }
  0x1f   :  { %v4089_v29 = vcombine.high %v215_v24, %v219_v25  ;;  %v79_v30 = vld [vmem:[%s5914_s1 + $0xc0] sm:$0xff]  ;;  %1653 = vmatprep.subr.bf16.mxu0 %v3961_v28  ;;  %v4088_v35 = vcombine.low %v215_v24, %v219_v25 }
  0x20   :  { %v83_v31 = vld [vmem:[%s5914_s1 + $0xe0] sm:$0xff]  ;;  %1654 = vmatpush1.bf16.msra.mxu0 %v3960_v34 }
  0x21   :  { %v207_v32 = vld [vmem:[%s5914_s1 + $0x4c0] sm:$0xff]  ;;  %v3953_v36 = vcombine.high %v79_v30, %v83_v31  ;;  %1694 = vmatprep.subr.bf16.mxu1 %v4089_v29  ;;  %v3952_v42 = vcombine.low %v79_v30, %v83_v31 }
  0x22   :  { %v211_v33 = vld [vmem:[%s5914_s1 + $0x4e0] sm:$0xff]  ;;  %1695 = vmatpush1.bf16.msra.mxu1 %v4088_v35 }
  0x23   :  { %v4081_v37 = vcombine.high %v207_v32, %v211_v33  ;;  %v71_v38 = vld [vmem:[%s5914_s1 + $0x80] sm:$0xff]  ;;  %1655 = vmatprep.subr.bf16.mxu0 %v3953_v36  ;;  %v4080_v43 = vcombine.low %v207_v32, %v211_v33 }
  0x24   :  { %v75_v39 = vld [vmem:[%s5914_s1 + $0xa0] sm:$0xff]  ;;  %1656 = vmatpush1.bf16.msra.mxu0 %v3952_v42 }
  0x25   :  { %v199_v40 = vld [vmem:[%s5914_s1 + $0x480] sm:$0xff]  ;;  %v3945_v44 = vcombine.high %v71_v38, %v75_v39  ;;  %1696 = vmatprep.subr.bf16.mxu1 %v4081_v37  ;;  %v3944_v50 = vcombine.low %v71_v38, %v75_v39 }
  0x26   :  { %v203_v41 = vld [vmem:[%s5914_s1 + $0x4a0] sm:$0xff]  ;;  %1697 = vmatpush1.bf16.msra.mxu1 %v4080_v43 }
  0x27   :  { %v4073_v45 = vcombine.high %v199_v40, %v203_v41  ;;  %v63_v46 = vld [vmem:[%s5914_s1 + $0x40] sm:$0xff]  ;;  %1657 = vmatprep.subr.bf16.mxu0 %v3945_v44  ;;  %v4072_v51 = vcombine.low %v199_v40, %v203_v41 }
  0x28   :  { %v67_v47 = vld [vmem:[%s5914_s1 + $0x60] sm:$0xff]  ;;  %1658 = vmatpush1.bf16.msra.mxu0 %v3944_v50 }
  0x29   :  { %v191_v48 = vld [vmem:[%s5914_s1 + $0x440] sm:$0xff]  ;;  %v3937_v52 = vcombine.high %v63_v46, %v67_v47  ;;  %1698 = vmatprep.subr.bf16.mxu1 %v4073_v45  ;;  %v3936_v62 = vcombine.low %v63_v46, %v67_v47 }
  0x2a   :  { %v195_v49 = vld [vmem:[%s5914_s1 + $0x460] sm:$0xff]  ;;  %1699 = vmatpush1.bf16.msra.mxu1 %v4072_v51 }
  0x2b   :  { %v5040_v53 = vld [vmem:[%s5913_s0] sm:$0xff]  ;;  %v4065_v55 = vcombine.high %v191_v48, %v195_v49  ;;  %1659 = vmatprep.subr.bf16.mxu0 %v3937_v52  ;;  %v4064_v63 = vcombine.low %v191_v48, %v195_v49 }
  0x2c   :  { %v55_v56 = vld [vmem:[%s5914_s1] sm:$0xff]  ;;  %v5055_v58 = vcombine.high %v5040_v53, %v5040_v53  ;;  %1660 = vmatpush1.bf16.msra.mxu0 %v3936_v62 }
  0x2d   :  { %v59_v57 = vld [vmem:[%s5914_s1 + $0x20] sm:$0xff]  ;;  %1700 = vmatprep.subr.bf16.mxu1 %v4065_v55 }
  0x2e   :  { %v183_v60 = vld [vmem:[%s5914_s1 + $0x400] sm:$0xff]  ;;  %1679 = vmatprep.mubr.bf16.mxu0 %v5055_v58  ;;  %v3929_v0 = vcombine.high %v55_v56, %v59_v57  ;;  %v3928_v6 = vcombine.low %v55_v56, %v59_v57  ;;  %1701 = vmatpush1.bf16.msra.mxu1 %v4064_v63 }
  0x2f   :  { %v187_v61 = vld [vmem:[%s5914_s1 + $0x420] sm:$0xff] }
  0x30   :  { %v4057_v1 = vcombine.high %v183_v60, %v187_v61  ;;  %v175_v2 = vld [vmem:[%s5914_s1 + $0x3c0] sm:$0xff]  ;;  %1661 = vmatprep.subr.bf16.mxu0 %v3929_v0  ;;  %v4056_v7 = vcombine.low %v183_v60, %v187_v61 }
  0x31   :  { %v179_v3 = vld [vmem:[%s5914_s1 + $0x3e0] sm:$0xff]  ;;  %1662 = vmatpush1.bf16.msra.mxu0 %v3928_v6  ;;  %v112_v6 = vld [vmem:[%s5914_s1 + $0x1c8] sm:$0xff] }
  0x32   :  { %v303_v4 = vld [vmem:[%s5914_s1 + $0x7c0] sm:$0xff]  ;;  %v4049_v8 = vcombine.high %v175_v2, %v179_v3  ;;  %1702 = vmatprep.subr.bf16.mxu1 %v4057_v1  ;;  %v4048_v14 = vcombine.low %v175_v2, %v179_v3 }
  0x33   :  { %v307_v5 = vld [vmem:[%s5914_s1 + $0x7e0] sm:$0xff]  ;;  %1703 = vmatpush1.bf16.msra.mxu1 %v4056_v7  ;;  %v116_v7 = vld [vmem:[%s5914_s1 + $0x1e8] sm:$0xff] }
  0x34   :  { %v4177_v9 = vcombine.high %v303_v4, %v307_v5  ;;  %v167_v10 = vld [vmem:[%s5914_s1 + $0x380] sm:$0xff]  ;;  %1663 = vmatprep.subr.bf16.mxu0 %v4049_v8  ;;  %v4176_v15 = vcombine.low %v303_v4, %v307_v5  ;;  %v240_v8 = vld [vmem:[%s5914_s1 + $0x5c8] sm:$0xff] }
  0x35   :  { %v171_v11 = vld [vmem:[%s5914_s1 + $0x3a0] sm:$0xff]  ;;  %1664 = vmatpush2.bf16.msra.mxu0 %v4048_v14  ;;  %v104_v14 = vld [vmem:[%s5914_s1 + $0x188] sm:$0xff] }
  0x36   :  { %v295_v12 = vld [vmem:[%s5914_s1 + $0x780] sm:$0xff]  ;;  %v4041_v16 = vcombine.high %v167_v10, %v171_v11  ;;  %1704 = vmatprep.subr.bf16.mxu1 %v4177_v9  ;;  %v4040_v22 = vcombine.low %v167_v10, %v171_v11  ;;  %v244_v9 = vld [vmem:[%s5914_s1 + $0x5e8] sm:$0xff] }
  0x37   :  { %v299_v13 = vld [vmem:[%s5914_s1 + $0x7a0] sm:$0xff]  ;;  %1705 = vmatpush2.bf16.msra.mxu1 %v4176_v15  ;;  %v108_v15 = vld [vmem:[%s5914_s1 + $0x1a8] sm:$0xff] }
  0x38   :  { %v4169_v17 = vcombine.high %v295_v12, %v299_v13  ;;  %v159_v18 = vld [vmem:[%s5914_s1 + $0x340] sm:$0xff]  ;;  %1665 = vmatprep.subr.bf16.mxu0 %v4041_v16  ;;  %v4168_v23 = vcombine.low %v295_v12, %v299_v13  ;;  %v3987_v12 = vcombine.high %v112_v6, %v116_v7  ;;  %v4115_v13 = vcombine.high %v240_v8, %v244_v9 }
  0x39   :  { %v163_v19 = vld [vmem:[%s5914_s1 + $0x360] sm:$0xff]  ;;  %1666 = vmatpush2.bf16.msra.mxu0 %v4040_v22  ;;  %v5185_v16 = vcombine.low %v5040_v53, %v5040_v53  ;;  %v3979_v22 = vcombine.high %v104_v14, %v108_v15  ;;  %v96_v53 = vld [vmem:[%s5914_s1 + $0x148] sm:$0xff] }
  0x3a   :  { %v287_v20 = vld [vmem:[%s5914_s1 + $0x740] sm:$0xff]  ;;  %v4033_v24 = vcombine.high %v159_v18, %v163_v19  ;;  %1706 = vmatprep.subr.bf16.mxu1 %v4169_v17  ;;  %v4032_v30 = vcombine.low %v159_v18, %v163_v19  ;;  %v232_v17 = vld [vmem:[%s5914_s1 + $0x588] sm:$0xff]  ;;  %v5195_v19 = vcombine.low %v5045_v54, %v5045_v54 }
  0x3b   :  { %v291_v21 = vld [vmem:[%s5914_s1 + $0x760] sm:$0xff]  ;;  %1707 = vmatpush2.bf16.msra.mxu1 %v4168_v23  ;;  %v236_v18 = vld [vmem:[%s5914_s1 + $0x5a8] sm:$0xff] }
  0x3c   :  { %v4161_v25 = vcombine.high %v287_v20, %v291_v21  ;;  %v151_v26 = vld [vmem:[%s5914_s1 + $0x300] sm:$0xff]  ;;  %1667 = vmatprep.subr.bf16.mxu0 %v4033_v24  ;;  %v4160_v31 = vcombine.low %v287_v20, %v291_v21  ;;  %v3986_v20 = vcombine.low %v112_v6, %v116_v7  ;;  %v4114_v21 = vcombine.low %v240_v8, %v244_v9  ;;  %v100_v23 = vld [vmem:[%s5914_s1 + $0x168] sm:$0xff] }
  0x3d   :  { %v155_v27 = vld [vmem:[%s5914_s1 + $0x320] sm:$0xff]  ;;  %1668 = vmatpush2.bf16.msra.mxu0 %v4032_v30  ;;  %v224_v24 = vld [vmem:[%s5914_s1 + $0x548] sm:$0xff]  ;;  %v4107_v54 = vcombine.high %v232_v17, %v236_v18 }
  0x3e   :  { %v279_v28 = vld [vmem:[%s5914_s1 + $0x700] sm:$0xff]  ;;  %v4025_v32 = vcombine.high %v151_v26, %v155_v27  ;;  %1708 = vmatprep.subr.bf16.mxu1 %v4161_v25  ;;  %v4024_v38 = vcombine.low %v151_v26, %v155_v27  ;;  %v228_v25 = vld [vmem:[%s5914_s1 + $0x568] sm:$0xff]  ;;  %v3978_v26 = vcombine.low %v104_v14, %v108_v15  ;;  %v4106_v27 = vcombine.low %v232_v17, %v236_v18 }
  0x3f   :  { %v283_v29 = vld [vmem:[%s5914_s1 + $0x720] sm:$0xff]  ;;  %1709 = vmatpush2.bf16.msra.mxu1 %v4160_v31  ;;  %v92_v30 = vld [vmem:[%s5914_s1 + $0x128] sm:$0xff] }
  0x40   :  { %v4153_v33 = vcombine.high %v279_v28, %v283_v29  ;;  %v143_v34 = vld [vmem:[%s5914_s1 + $0x2c0] sm:$0xff]  ;;  %1669 = vmatprep.subr.bf16.mxu0 %v4025_v32  ;;  %v4152_v39 = vcombine.low %v279_v28, %v283_v29  ;;  %v3971_v28 = vcombine.high %v96_v53, %v100_v23  ;;  %v88_v29 = vld [vmem:[%s5914_s1 + $0x108] sm:$0xff]  ;;  %v4099_v32 = vcombine.high %v224_v24, %v228_v25 }
  0x41   :  { %v147_v35 = vld [vmem:[%s5914_s1 + $0x2e0] sm:$0xff]  ;;  %1670 = vmatpush2.bf16.msra.mxu0 %v4024_v38  ;;  %v216_v31 = vld [vmem:[%s5914_s1 + $0x508] sm:$0xff] }
  0x42   :  { %v271_v36 = vld [vmem:[%s5914_s1 + $0x6c0] sm:$0xff]  ;;  %v4017_v40 = vcombine.high %v143_v34, %v147_v35  ;;  %1710 = vmatprep.subr.bf16.mxu1 %v4153_v33  ;;  %v4016_v46 = vcombine.low %v143_v34, %v147_v35  ;;  %v220_v33 = vld [vmem:[%s5914_s1 + $0x528] sm:$0xff]  ;;  %v3970_v34 = vcombine.low %v96_v53, %v100_v23  ;;  %v4098_v35 = vcombine.low %v224_v24, %v228_v25 }
  0x43   :  { %v275_v37 = vld [vmem:[%s5914_s1 + $0x6e0] sm:$0xff]  ;;  %1711 = vmatpush2.bf16.msra.mxu1 %v4152_v39  ;;  %v84_v38 = vld [vmem:[%s5914_s1 + $0xe8] sm:$0xff] }
  0x44   :  { %v4145_v41 = vcombine.high %v271_v36, %v275_v37  ;;  %v135_v42 = vld [vmem:[%s5914_s1 + $0x280] sm:$0xff]  ;;  %1671 = vmatprep.subr.bf16.mxu0 %v4017_v40  ;;  %v4144_v47 = vcombine.low %v271_v36, %v275_v37  ;;  %v3963_v36 = vcombine.high %v88_v29, %v92_v30  ;;  %v80_v37 = vld [vmem:[%s5914_s1 + $0xc8] sm:$0xff]  ;;  %v4091_v40 = vcombine.high %v216_v31, %v220_v33 }
  0x45   :  { %v139_v43 = vld [vmem:[%s5914_s1 + $0x2a0] sm:$0xff]  ;;  %1672 = vmatpush2.bf16.msra.mxu0 %v4016_v46  ;;  %v208_v39 = vld [vmem:[%s5914_s1 + $0x4c8] sm:$0xff] }
  0x46   :  { %v263_v44 = vld [vmem:[%s5914_s1 + $0x680] sm:$0xff]  ;;  %v4009_v48 = vcombine.high %v135_v42, %v139_v43  ;;  %1712 = vmatprep.subr.bf16.mxu1 %v4145_v41  ;;  %v4008_v56 = vcombine.low %v135_v42, %v139_v43  ;;  %v212_v41 = vld [vmem:[%s5914_s1 + $0x4e8] sm:$0xff]  ;;  %v3962_v42 = vcombine.low %v88_v29, %v92_v30  ;;  %v4090_v43 = vcombine.low %v216_v31, %v220_v33 }
  0x47   :  { %v267_v45 = vld [vmem:[%s5914_s1 + $0x6a0] sm:$0xff]  ;;  %1713 = vmatpush2.bf16.msra.mxu1 %v4144_v47  ;;  %v76_v46 = vld [vmem:[%s5914_s1 + $0xa8] sm:$0xff] }
  0x48   :  { %v4137_v49 = vcombine.high %v263_v44, %v267_v45  ;;  %v127_v50 = vld [vmem:[%s5914_s1 + $0x240] sm:$0xff]  ;;  %1673 = vmatprep.subr.bf16.mxu0 %v4009_v48  ;;  %v4136_v57 = vcombine.low %v263_v44, %v267_v45  ;;  %v3955_v44 = vcombine.high %v80_v37, %v84_v38  ;;  %v72_v45 = vld [vmem:[%s5914_s1 + $0x88] sm:$0xff]  ;;  %v4083_v48 = vcombine.high %v208_v39, %v212_v41 }
  0x49   :  { %v131_v51 = vld [vmem:[%s5914_s1 + $0x260] sm:$0xff]  ;;  %1674 = vmatpush2.bf16.msra.mxu0 %v4008_v56  ;;  %v200_v47 = vld [vmem:[%s5914_s1 + $0x488] sm:$0xff] }
  0x4a   :  { %v255_v52 = vld [vmem:[%s5914_s1 + $0x640] sm:$0xff]  ;;  %v4001_v60 = vcombine.high %v127_v50, %v131_v51  ;;  %1714 = vmatprep.subr.bf16.mxu1 %v4137_v49  ;;  %v4000_v2 = vcombine.low %v127_v50, %v131_v51  ;;  %v204_v49 = vld [vmem:[%s5914_s1 + $0x4a8] sm:$0xff]  ;;  %v3954_v50 = vcombine.low %v80_v37, %v84_v38  ;;  %v4082_v51 = vcombine.low %v208_v39, %v212_v41 }
  0x4b   :  { %v259_v55 = vld [vmem:[%s5914_s1 + $0x660] sm:$0xff]  ;;  %1715 = vmatpush2.bf16.msra.mxu1 %v4136_v57  ;;  %v68_v56 = vld [vmem:[%s5914_s1 + $0x68] sm:$0xff] }
  0x4c   :  { %v4129_v61 = vcombine.high %v255_v52, %v259_v55  ;;  %v119_v62 = vld [vmem:[%s5914_s1 + $0x200] sm:$0xff]  ;;  %1675 = vmatprep.subr.bf16.mxu0 %v4001_v60  ;;  %v4128_v3 = vcombine.low %v255_v52, %v259_v55  ;;  %v3947_v52 = vcombine.high %v72_v45, %v76_v46  ;;  %v64_v55 = vld [vmem:[%s5914_s1 + $0x48] sm:$0xff]  ;;  %v4075_v60 = vcombine.high %v200_v47, %v204_v49 }
  0x4d   :  { %v123_v63 = vld [vmem:[%s5914_s1 + $0x220] sm:$0xff]  ;;  %1676 = vmatpush2.bf16.msra.mxu0 %v4000_v2  ;;  %v192_v57 = vld [vmem:[%s5914_s1 + $0x448] sm:$0xff]  ;;  %v3938_v6 = vcombine.low %v64_v55, %v68_v56 }
  0x4e   :  { %v247_v0 = vld [vmem:[%s5914_s1 + $0x600] sm:$0xff]  ;;  %v3993_v4 = vcombine.high %v119_v62, %v123_v63  ;;  %1716 = vmatprep.subr.bf16.mxu1 %v4129_v61  ;;  %v3992_v10 = vcombine.low %v119_v62, %v123_v63  ;;  %v196_v61 = vld [vmem:[%s5914_s1 + $0x468] sm:$0xff]  ;;  %v3946_v62 = vcombine.low %v72_v45, %v76_v46  ;;  %v4074_v63 = vcombine.low %v200_v47, %v204_v49 }
  0x4f   :  { %v251_v1 = vld [vmem:[%s5914_s1 + $0x620] sm:$0xff]  ;;  %1717 = vmatpush2.bf16.msra.mxu1 %v4128_v3  ;;  %v60_v2 = vld [vmem:[%s5914_s1 + $0x28] sm:$0xff]  ;;  %v4066_v7 = vcombine.low %v192_v57, %v196_v61 }
  0x50   :  { %v4121_v5 = vcombine.high %v247_v0, %v251_v1  ;;  %1677 = vmatprep.subr.bf16.mxu0 %v3993_v4  ;;  %v4120_v11 = vcombine.low %v247_v0, %v251_v1  ;;  %v3939_v0 = vcombine.high %v64_v55, %v68_v56  ;;  %v56_v1 = vld [vmem:[%s5914_s1 + $0x8] sm:$0xff]  ;;  %v4067_v4 = vcombine.high %v192_v57, %v196_v61 }
  0x51   :  { %1678 = vmatpush2.bf16.msra.mxu0 %v3992_v10  ;;  %v184_v3 = vld [vmem:[%s5914_s1 + $0x408] sm:$0xff]  ;;  %v3931_v8 = vcombine.high %v56_v1, %v60_v2  ;;  %v3930_v14 = vcombine.low %v56_v1, %v60_v2 }
  0x52   :  { %1718 = vmatprep.subr.bf16.mxu1 %v4121_v5  ;;  %1729 = vmatprep.subr.bf16.mxu0 %v3987_v12  ;;  %v188_v5 = vld [vmem:[%s5914_s1 + $0x428] sm:$0xff] }
  0x53   :  { %1719 = vmatpush2.bf16.msra.mxu1 %v4120_v11  ;;  %v176_v9 = vld [vmem:[%s5914_s1 + $0x3c8] sm:$0xff]  ;;  %v4059_v12 = vcombine.high %v184_v3, %v188_v5  ;;  %v4058_v15 = vcombine.low %v184_v3, %v188_v5 }
  0x54   :  { %1770 = vmatprep.subr.bf16.mxu1 %v4115_v13  ;;  %1680 = vmatmul.mubr.bf16.vlgmr.msra.gmra.mxu0 %v5185_v16  ;;  %v180_v10 = vld [vmem:[%s5914_s1 + $0x3e8] sm:$0xff] }
  0x55   :  { %1730 = vmatpush1.bf16.msra.mxu0 %v3986_v20  ;;  %1761 = vmatprep.mubr.bf16.mxu0 %v5055_v58  ;;  %v304_v11 = vld [vmem:[%s5914_s1 + $0x7c8] sm:$0xff]  ;;  %v4051_v17 = vcombine.high %v176_v9, %v180_v10  ;;  %v4050_v23 = vcombine.low %v176_v9, %v180_v10 }
  0x56   :  { %1721 = vmatmul.mubr.bf16.vlgmr.msra.gmra.mxu1 %v5195_v19  ;;  %1731 = vmatprep.subr.bf16.mxu0 %v3979_v22  ;;  %v308_v13 = vld [vmem:[%s5914_s1 + $0x7e8] sm:$0xff] }
  0x57   :  { %1771 = vmatpush1.bf16.msra.mxu1 %v4114_v21  ;;  %1802 = vmatprep.mubr.bf16.mxu1 %v5059_v59  ;;  %v168_v18 = vld [vmem:[%s5914_s1 + $0x388] sm:$0xff]  ;;  %v4179_v22 = vcombine.high %v304_v11, %v308_v13  ;;  %v4178_v24 = vcombine.low %v304_v11, %v308_v13  ;;  %v113_v13 = vld [vmem:[%s5914_s1 + $0x1d0] sm:$0xff] }
  0x58   :  { %1772 = vmatprep.subr.bf16.mxu1 %v4107_v54  ;;  %v172_v20 = vld [vmem:[%s5914_s1 + $0x3a8] sm:$0xff] }
  0x59   :  { %1732 = vmatpush1.bf16.msra.mxu0 %v3978_v26  ;;  %v296_v21 = vld [vmem:[%s5914_s1 + $0x788] sm:$0xff]  ;;  %v4043_v54 = vcombine.high %v168_v18, %v172_v20  ;;  %v4042_v30 = vcombine.low %v168_v18, %v172_v20  ;;  %v245_v18 = vld [vmem:[%s5914_s1 + $0x5f0] sm:$0xff] }
  0x5a   :  { %1733 = vmatprep.subr.bf16.mxu0 %v3971_v28  ;;  %v300_v53 = vld [vmem:[%s5914_s1 + $0x7a8] sm:$0xff] }
  0x5b   :  { %1773 = vmatpush1.bf16.msra.mxu1 %v4106_v27  ;;  %v160_v25 = vld [vmem:[%s5914_s1 + $0x348] sm:$0xff]  ;;  %v4171_v28 = vcombine.high %v296_v21, %v300_v53  ;;  %v4170_v31 = vcombine.low %v296_v21, %v300_v53  ;;  %v105_v53 = vld [vmem:[%s5914_s1 + $0x190] sm:$0xff] }
  0x5c   :  { %1774 = vmatprep.subr.bf16.mxu1 %v4099_v32  ;;  %v164_v26 = vld [vmem:[%s5914_s1 + $0x368] sm:$0xff] }
  0x5d   :  { %1734 = vmatpush1.bf16.msra.mxu0 %v3970_v34  ;;  %v288_v27 = vld [vmem:[%s5914_s1 + $0x748] sm:$0xff]  ;;  %v4035_v32 = vcombine.high %v160_v25, %v164_v26  ;;  %v4034_v38 = vcombine.low %v160_v25, %v164_v26  ;;  %v237_v25 = vld [vmem:[%s5914_s1 + $0x5b0] sm:$0xff] }
  0x5e   :  { %1735 = vmatprep.subr.bf16.mxu0 %v3963_v36  ;;  %v292_v29 = vld [vmem:[%s5914_s1 + $0x768] sm:$0xff] }
  0x5f   :  { %1775 = vmatpush1.bf16.msra.mxu1 %v4098_v35  ;;  %v152_v33 = vld [vmem:[%s5914_s1 + $0x308] sm:$0xff]  ;;  %v4163_v36 = vcombine.high %v288_v27, %v292_v29  ;;  %v4162_v39 = vcombine.low %v288_v27, %v292_v29  ;;  %v97_v27 = vld [vmem:[%s5914_s1 + $0x150] sm:$0xff] }
  0x60   :  { %1776 = vmatprep.subr.bf16.mxu1 %v4091_v40  ;;  %v156_v34 = vld [vmem:[%s5914_s1 + $0x328] sm:$0xff] }
  0x61   :  { %1736 = vmatpush1.bf16.msra.mxu0 %v3962_v42  ;;  %v280_v35 = vld [vmem:[%s5914_s1 + $0x708] sm:$0xff]  ;;  %v4027_v40 = vcombine.high %v152_v33, %v156_v34  ;;  %v4026_v46 = vcombine.low %v152_v33, %v156_v34  ;;  %v229_v33 = vld [vmem:[%s5914_s1 + $0x570] sm:$0xff] }
  0x62   :  { %1737 = vmatprep.subr.bf16.mxu0 %v3955_v44  ;;  %v284_v37 = vld [vmem:[%s5914_s1 + $0x728] sm:$0xff] }
  0x63   :  { %1777 = vmatpush1.bf16.msra.mxu1 %v4090_v43  ;;  %v144_v41 = vld [vmem:[%s5914_s1 + $0x2c8] sm:$0xff]  ;;  %v4155_v44 = vcombine.high %v280_v35, %v284_v37  ;;  %v4154_v47 = vcombine.low %v280_v35, %v284_v37  ;;  %v89_v35 = vld [vmem:[%s5914_s1 + $0x110] sm:$0xff] }
  0x64   :  { %1778 = vmatprep.subr.bf16.mxu1 %v4083_v48  ;;  %v148_v42 = vld [vmem:[%s5914_s1 + $0x2e8] sm:$0xff] }
  0x65   :  { %1738 = vmatpush1.bf16.msra.mxu0 %v3954_v50  ;;  %v272_v43 = vld [vmem:[%s5914_s1 + $0x6c8] sm:$0xff]  ;;  %v4019_v48 = vcombine.high %v144_v41, %v148_v42  ;;  %v4018_v56 = vcombine.low %v144_v41, %v148_v42  ;;  %v221_v41 = vld [vmem:[%s5914_s1 + $0x530] sm:$0xff] }
  0x66   :  { %1739 = vmatprep.subr.bf16.mxu0 %v3947_v52  ;;  %v276_v45 = vld [vmem:[%s5914_s1 + $0x6e8] sm:$0xff] }
  0x67   :  { %1779 = vmatpush1.bf16.msra.mxu1 %v4082_v51  ;;  %v136_v49 = vld [vmem:[%s5914_s1 + $0x288] sm:$0xff]  ;;  %v4147_v52 = vcombine.high %v272_v43, %v276_v45  ;;  %v4146_v57 = vcombine.low %v272_v43, %v276_v45  ;;  %v81_v43 = vld [vmem:[%s5914_s1 + $0xd0] sm:$0xff] }
  0x68   :  { %1780 = vmatprep.subr.bf16.mxu1 %v4075_v60  ;;  %v140_v50 = vld [vmem:[%s5914_s1 + $0x2a8] sm:$0xff] }
  0x69   :  { %1740 = vmatpush1.bf16.msra.mxu0 %v3946_v62  ;;  %v264_v51 = vld [vmem:[%s5914_s1 + $0x688] sm:$0xff]  ;;  %v4011_v60 = vcombine.high %v136_v49, %v140_v50  ;;  %v4010_v2 = vcombine.low %v136_v49, %v140_v50  ;;  %v213_v49 = vld [vmem:[%s5914_s1 + $0x4f0] sm:$0xff] }
  0x6a   :  { %1741 = vmatprep.subr.bf16.mxu0 %v3939_v0  ;;  %v268_v55 = vld [vmem:[%s5914_s1 + $0x6a8] sm:$0xff] }
  0x6b   :  { %1781 = vmatpush1.bf16.msra.mxu1 %v4074_v63  ;;  %v128_v61 = vld [vmem:[%s5914_s1 + $0x248] sm:$0xff]  ;;  %v4139_v0 = vcombine.high %v264_v51, %v268_v55  ;;  %v4138_v3 = vcombine.low %v264_v51, %v268_v55 }
  0x6c   :  { %1782 = vmatprep.subr.bf16.mxu1 %v4067_v4  ;;  %v132_v62 = vld [vmem:[%s5914_s1 + $0x268] sm:$0xff] }
  0x6d   :  { %1742 = vmatpush1.bf16.msra.mxu0 %v3938_v6  ;;  %v256_v63 = vld [vmem:[%s5914_s1 + $0x648] sm:$0xff]  ;;  %v4003_v4 = vcombine.high %v128_v61, %v132_v62  ;;  %v4002_v10 = vcombine.low %v128_v61, %v132_v62  ;;  %v205_v61 = vld [vmem:[%s5914_s1 + $0x4b0] sm:$0xff] }
  0x6e   :  { %1743 = vmatprep.subr.bf16.mxu0 %v3931_v8  ;;  %v260_v1 = vld [vmem:[%s5914_s1 + $0x668] sm:$0xff] }
  0x6f   :  { %1783 = vmatpush1.bf16.msra.mxu1 %v4066_v7  ;;  %v120_v5 = vld [vmem:[%s5914_s1 + $0x208] sm:$0xff]  ;;  %v4131_v8 = vcombine.high %v256_v63, %v260_v1  ;;  %v4130_v11 = vcombine.low %v256_v63, %v260_v1  ;;  %v65_v63 = vld [vmem:[%s5914_s1 + $0x50] sm:$0xff] }
  0x70   :  { %1784 = vmatprep.subr.bf16.mxu1 %v4059_v12  ;;  %v124_v6 = vld [vmem:[%s5914_s1 + $0x228] sm:$0xff] }
  0x71   :  { %1744 = vmatpush1.bf16.msra.mxu0 %v3930_v14  ;;  %v248_v7 = vld [vmem:[%s5914_s1 + $0x608] sm:$0xff]  ;;  %v3995_v12 = vcombine.high %v120_v5, %v124_v6  ;;  %v117_v14 = vld [vmem:[%s5914_s1 + $0x1f0] sm:$0xff]  ;;  %v3994_v20 = vcombine.low %v120_v5, %v124_v6 }
  0x72   :  { %1745 = vmatprep.subr.bf16.mxu0 %v4051_v17  ;;  %v252_v9 = vld [vmem:[%s5914_s1 + $0x628] sm:$0xff]  ;;  %v3988_v26 = vcombine.low %v113_v13, %v117_v14 }
  0x73   :  { %1785 = vmatpush1.bf16.msra.mxu1 %v4058_v15  ;;  %v241_v15 = vld [vmem:[%s5914_s1 + $0x5d0] sm:$0xff]  ;;  %v4123_v17 = vcombine.high %v248_v7, %v252_v9  ;;  %v4122_v21 = vcombine.low %v248_v7, %v252_v9 }
  0x74   :  { %1786 = vmatprep.subr.bf16.mxu1 %v4179_v22  ;;  %v3989_v22 = vcombine.high %v113_v13, %v117_v14  ;;  %v57_v7 = vld [vmem:[%s5914_s1 + $0x10] sm:$0xff] }
  0x75   :  { %1746 = vmatpush2.bf16.msra.mxu0 %v4050_v23  ;;  %v109_v23 = vld [vmem:[%s5914_s1 + $0x1b0] sm:$0xff] }
  0x76   :  { %1747 = vmatprep.subr.bf16.mxu0 %v4043_v54  ;;  %v4117_v54 = vcombine.high %v241_v15, %v245_v18  ;;  %v3981_v29 = vcombine.high %v105_v53, %v109_v23  ;;  %v3980_v34 = vcombine.low %v105_v53, %v109_v23 }
  0x77   :  { %1787 = vmatpush2.bf16.msra.mxu1 %v4178_v24  ;;  %v233_v24 = vld [vmem:[%s5914_s1 + $0x590] sm:$0xff] }
  0x78   :  { %1788 = vmatprep.subr.bf16.mxu1 %v4171_v28  ;;  %v4116_v28 = vcombine.low %v241_v15, %v245_v18  ;;  %v4108_v37 = vcombine.low %v233_v24, %v237_v25  ;;  %v177_v15 = vld [vmem:[%s5914_s1 + $0x3d0] sm:$0xff] }
  0x79   :  { %1748 = vmatpush2.bf16.msra.mxu0 %v4042_v30  ;;  %v101_v30 = vld [vmem:[%s5914_s1 + $0x170] sm:$0xff] }
  0x7a   :  { %1749 = vmatprep.subr.bf16.mxu0 %v4035_v32  ;;  %v225_v32 = vld [vmem:[%s5914_s1 + $0x550] sm:$0xff]  ;;  %v3972_v42 = vcombine.low %v97_v27, %v101_v30 }
  0x7b   :  { %1789 = vmatpush2.bf16.msra.mxu1 %v4170_v31  ;;  %v4109_v31 = vcombine.high %v233_v24, %v237_v25  ;;  %v4100_v45 = vcombine.low %v225_v32, %v229_v33  ;;  %v169_v24 = vld [vmem:[%s5914_s1 + $0x390] sm:$0xff] }
  0x7c   :  { %1790 = vmatprep.subr.bf16.mxu1 %v4163_v36  ;;  %v93_v36 = vld [vmem:[%s5914_s1 + $0x130] sm:$0xff] }
  0x7d   :  { %1750 = vmatpush2.bf16.msra.mxu0 %v4034_v38  ;;  %v3973_v38 = vcombine.high %v97_v27, %v101_v30  ;;  %v3964_v50 = vcombine.low %v89_v35, %v93_v36  ;;  %v297_v27 = vld [vmem:[%s5914_s1 + $0x790] sm:$0xff] }
  0x7e   :  { %1751 = vmatprep.subr.bf16.mxu0 %v4027_v40  ;;  %v217_v40 = vld [vmem:[%s5914_s1 + $0x510] sm:$0xff] }
  0x7f   :  { %1791 = vmatpush2.bf16.msra.mxu1 %v4162_v39  ;;  %v4101_v39 = vcombine.high %v225_v32, %v229_v33  ;;  %v4092_v51 = vcombine.low %v217_v40, %v221_v41  ;;  %v165_v32 = vld [vmem:[%s5914_s1 + $0x370] sm:$0xff] }
  0x80   :  { %1792 = vmatprep.subr.bf16.mxu1 %v4155_v44  ;;  %v85_v44 = vld [vmem:[%s5914_s1 + $0xf0] sm:$0xff] }
  0x81   :  { %1752 = vmatpush2.bf16.msra.mxu0 %v4026_v46  ;;  %v3965_v46 = vcombine.high %v89_v35, %v93_v36  ;;  %v3956_v62 = vcombine.low %v81_v43, %v85_v44  ;;  %v289_v35 = vld [vmem:[%s5914_s1 + $0x750] sm:$0xff] }
  0x82   :  { %1753 = vmatprep.subr.bf16.mxu0 %v4019_v48  ;;  %v209_v48 = vld [vmem:[%s5914_s1 + $0x4d0] sm:$0xff] }
  0x83   :  { %1793 = vmatpush2.bf16.msra.mxu1 %v4154_v47  ;;  %v4093_v47 = vcombine.high %v217_v40, %v221_v41  ;;  %v4085_v55 = vcombine.high %v209_v48, %v213_v49  ;;  %v4084_v1 = vcombine.low %v209_v48, %v213_v49  ;;  %v293_v36 = vld [vmem:[%s5914_s1 + $0x770] sm:$0xff] }
  0x84   :  { %1794 = vmatprep.subr.bf16.mxu1 %v4147_v52  ;;  %v3957_v52 = vcombine.high %v81_v43, %v85_v44  ;;  %v157_v40 = vld [vmem:[%s5914_s1 + $0x330] sm:$0xff]  ;;  %v4164_v49 = vcombine.low %v289_v35, %v293_v36 }
  0x85   :  { %1754 = vmatpush2.bf16.msra.mxu0 %v4018_v56  ;;  %v73_v56 = vld [vmem:[%s5914_s1 + $0x90] sm:$0xff] }
  0x86   :  { %1755 = vmatprep.subr.bf16.mxu0 %v4011_v60  ;;  %v201_v60 = vld [vmem:[%s5914_s1 + $0x490] sm:$0xff] }
  0x87   :  { %1795 = vmatpush2.bf16.msra.mxu1 %v4146_v57  ;;  %v77_v57 = vld [vmem:[%s5914_s1 + $0xb0] sm:$0xff]  ;;  %v4077_v5 = vcombine.high %v201_v60, %v205_v61  ;;  %v4076_v9 = vcombine.low %v201_v60, %v205_v61 }
  0x88   :  { %1796 = vmatprep.subr.bf16.mxu1 %v4139_v0  ;;  %v69_v0 = vld [vmem:[%s5914_s1 + $0x70] sm:$0xff]  ;;  %v3948_v6 = vcombine.low %v73_v56, %v77_v57 }
  0x89   :  { %1756 = vmatpush2.bf16.msra.mxu0 %v4010_v2  ;;  %v3949_v2 = vcombine.high %v73_v56, %v77_v57  ;;  %v3940_v14 = vcombine.low %v65_v63, %v69_v0  ;;  %v281_v43 = vld [vmem:[%s5914_s1 + $0x710] sm:$0xff] }
  0x8a   :  { %1757 = vmatprep.subr.bf16.mxu0 %v4003_v4  ;;  %v197_v4 = vld [vmem:[%s5914_s1 + $0x470] sm:$0xff] }
  0x8b   :  { %1797 = vmatpush2.bf16.msra.mxu1 %v4138_v3  ;;  %v193_v3 = vld [vmem:[%s5914_s1 + $0x450] sm:$0xff] }
  0x8c   :  { %1798 = vmatprep.subr.bf16.mxu1 %v4131_v8  ;;  %v61_v8 = vld [vmem:[%s5914_s1 + $0x30] sm:$0xff]  ;;  %v4069_v13 = vcombine.high %v193_v3, %v197_v4  ;;  %v4068_v18 = vcombine.low %v193_v3, %v197_v4 }
  0x8d   :  { %1758 = vmatpush2.bf16.msra.mxu0 %v4002_v10  ;;  %v3941_v10 = vcombine.high %v65_v63, %v69_v0  ;;  %v3932_v23 = vcombine.low %v57_v7, %v61_v8  ;;  %v285_v44 = vld [vmem:[%s5914_s1 + $0x730] sm:$0xff] }
  0x8e   :  { %1759 = vmatprep.subr.bf16.mxu0 %v3995_v12  ;;  %v189_v12 = vld [vmem:[%s5914_s1 + $0x430] sm:$0xff]  ;;  %v4156_v61 = vcombine.low %v281_v43, %v285_v44 }
  0x8f   :  { %1799 = vmatpush2.bf16.msra.mxu1 %v4130_v11  ;;  %v185_v11 = vld [vmem:[%s5914_s1 + $0x410] sm:$0xff] }
  0x90   :  { %1800 = vmatprep.subr.bf16.mxu1 %v4123_v17  ;;  %v181_v17 = vld [vmem:[%s5914_s1 + $0x3f0] sm:$0xff]  ;;  %v4061_v53 = vcombine.high %v185_v11, %v189_v12  ;;  %v4060_v25 = vcombine.low %v185_v11, %v189_v12 }
  0x91   :  { %1760 = vmatpush2.bf16.msra.mxu0 %v3994_v20  ;;  %v3933_v20 = vcombine.high %v57_v7, %v61_v8  ;;  %v4052_v30 = vcombine.low %v177_v15, %v181_v17  ;;  %v149_v48 = vld [vmem:[%s5914_s1 + $0x2f0] sm:$0xff] }
  0x92   :  { %1811 = vmatprep.subr.bf16.mxu0 %v3989_v22  ;;  %v309_v22 = vld [vmem:[%s5914_s1 + $0x7f0] sm:$0xff] }
  0x93   :  { %1801 = vmatpush2.bf16.msra.mxu1 %v4122_v21  ;;  %v305_v21 = vld [vmem:[%s5914_s1 + $0x7d0] sm:$0xff] }
  0x94   :  { %1852 = vmatprep.subr.bf16.mxu1 %v4117_v54  ;;  %1762 = vmatmul.mubr.bf16.vlgmr.msra.gmra.mxu0 %v5185_v16  ;;  %v173_v54 = vld [vmem:[%s5914_s1 + $0x3b0] sm:$0xff]  ;;  %v4180_v33 = vcombine.low %v305_v21, %v309_v22 }
  0x95   :  { %1812 = vmatpush1.bf16.msra.mxu0 %v3988_v26  ;;  %1843 = vmatprep.mubr.bf16.mxu0 %v5055_v58  ;;  %v4053_v26 = vcombine.high %v177_v15, %v181_v17  ;;  %v137_v57 = vld [vmem:[%s5914_s1 + $0x290] sm:$0xff] }
  0x96   :  { %1803 = vmatmul.mubr.bf16.vlgmr.msra.gmra.mxu1 %v5195_v19  ;;  %1813 = vmatprep.subr.bf16.mxu0 %v3981_v29  ;;  %v4181_v29 = vcombine.high %v305_v21, %v309_v22  ;;  %v141_v60 = vld [vmem:[%s5914_s1 + $0x2b0] sm:$0xff]  ;;  %v114_v21 = vld [vmem:[%s5914_s1 + $0x1d8] sm:$0xff] }
  0x97   :  { %1853 = vmatpush1.bf16.msra.mxu1 %v4116_v28  ;;  %1884 = vmatprep.mubr.bf16.mxu1 %v5059_v59  ;;  %v301_v28 = vld [vmem:[%s5914_s1 + $0x7b0] sm:$0xff]  ;;  %v118_v22 = vld [vmem:[%s5914_s1 + $0x1f8] sm:$0xff] }
  0x98   :  { %1854 = vmatprep.subr.bf16.mxu1 %v4109_v31  ;;  %v161_v31 = vld [vmem:[%s5914_s1 + $0x350] sm:$0xff]  ;;  %v4172_v41 = vcombine.low %v297_v27, %v301_v28 }
  0x99   :  { %1814 = vmatpush1.bf16.msra.mxu0 %v3980_v34  ;;  %v4045_v34 = vcombine.high %v169_v24, %v173_v54  ;;  %v265_v63 = vld [vmem:[%s5914_s1 + $0x690] sm:$0xff] }
  0x9a   :  { %1815 = vmatprep.subr.bf16.mxu0 %v3973_v38  ;;  %v4044_v38 = vcombine.low %v169_v24, %v173_v54  ;;  %v269_v0 = vld [vmem:[%s5914_s1 + $0x6b0] sm:$0xff]  ;;  %v242_v24 = vld [vmem:[%s5914_s1 + $0x5d8] sm:$0xff] }
  0x9b   :  { %1855 = vmatpush1.bf16.msra.mxu1 %v4108_v37  ;;  %v4173_v37 = vcombine.high %v297_v27, %v301_v28  ;;  %v129_v3 = vld [vmem:[%s5914_s1 + $0x250] sm:$0xff]  ;;  %v246_v54 = vld [vmem:[%s5914_s1 + $0x5f8] sm:$0xff] }
  0x9c   :  { %1856 = vmatprep.subr.bf16.mxu1 %v4101_v39  ;;  %v153_v39 = vld [vmem:[%s5914_s1 + $0x310] sm:$0xff]  ;;  %v106_v27 = vld [vmem:[%s5914_s1 + $0x198] sm:$0xff] }
  0x9d   :  { %1816 = vmatpush1.bf16.msra.mxu0 %v3972_v42  ;;  %v4037_v42 = vcombine.high %v161_v31, %v165_v32  ;;  %v4028_v56 = vcombine.low %v153_v39, %v157_v40  ;;  %v133_v4 = vld [vmem:[%s5914_s1 + $0x270] sm:$0xff]  ;;  %v110_v28 = vld [vmem:[%s5914_s1 + $0x1b8] sm:$0xff] }
  0x9e   :  { %1817 = vmatprep.subr.bf16.mxu0 %v3965_v46  ;;  %v4036_v46 = vcombine.low %v161_v31, %v165_v32  ;;  %v257_v7 = vld [vmem:[%s5914_s1 + $0x650] sm:$0xff]  ;;  %v234_v31 = vld [vmem:[%s5914_s1 + $0x598] sm:$0xff] }
  0x9f   :  { %1857 = vmatpush1.bf16.msra.mxu1 %v4100_v45  ;;  %v4165_v45 = vcombine.high %v289_v35, %v293_v36  ;;  %v261_v8 = vld [vmem:[%s5914_s1 + $0x670] sm:$0xff]  ;;  %v238_v32 = vld [vmem:[%s5914_s1 + $0x5b8] sm:$0xff]  ;;  %v4118_v36 = vcombine.low %v242_v24, %v246_v54 }
  0xa0   :  { %1858 = vmatprep.subr.bf16.mxu1 %v4093_v47  ;;  %v145_v47 = vld [vmem:[%s5914_s1 + $0x2d0] sm:$0xff]  ;;  %v98_v35 = vld [vmem:[%s5914_s1 + $0x158] sm:$0xff] }
  0xa1   :  { %1818 = vmatpush1.bf16.msra.mxu0 %v3964_v50  ;;  %v4029_v50 = vcombine.high %v153_v39, %v157_v40  ;;  %v121_v11 = vld [vmem:[%s5914_s1 + $0x210] sm:$0xff]  ;;  %v102_v39 = vld [vmem:[%s5914_s1 + $0x178] sm:$0xff] }
  0xa2   :  { %1819 = vmatprep.subr.bf16.mxu0 %v3957_v52  ;;  %v277_v52 = vld [vmem:[%s5914_s1 + $0x6f0] sm:$0xff]  ;;  %v226_v40 = vld [vmem:[%s5914_s1 + $0x558] sm:$0xff] }
  0xa3   :  { %1859 = vmatpush1.bf16.msra.mxu1 %v4092_v51  ;;  %v273_v51 = vld [vmem:[%s5914_s1 + $0x6d0] sm:$0xff] }
  0xa4   :  { %1860 = vmatprep.subr.bf16.mxu1 %v4085_v55  ;;  %v4157_v55 = vcombine.high %v281_v43, %v285_v44  ;;  %v125_v12 = vld [vmem:[%s5914_s1 + $0x230] sm:$0xff]  ;;  %v90_v43 = vld [vmem:[%s5914_s1 + $0x118] sm:$0xff] }
  0xa5   :  { %1820 = vmatpush1.bf16.msra.mxu0 %v3956_v62  ;;  %v4021_v62 = vcombine.high %v145_v47, %v149_v48  ;;  %v249_v15 = vld [vmem:[%s5914_s1 + $0x610] sm:$0xff]  ;;  %v94_v44 = vld [vmem:[%s5914_s1 + $0x138] sm:$0xff] }
  0xa6   :  { %1821 = vmatprep.subr.bf16.mxu0 %v3949_v2  ;;  %v4020_v2 = vcombine.low %v145_v47, %v149_v48  ;;  %v253_v17 = vld [vmem:[%s5914_s1 + $0x630] sm:$0xff]  ;;  %v218_v48 = vld [vmem:[%s5914_s1 + $0x518] sm:$0xff] }
  0xa7   :  { %1861 = vmatpush1.bf16.msra.mxu1 %v4084_v1  ;;  %v4149_v1 = vcombine.high %v273_v51, %v277_v52 }
  0xa8   :  { %1862 = vmatprep.subr.bf16.mxu1 %v4077_v5  ;;  %v4148_v5 = vcombine.low %v273_v51, %v277_v52  ;;  %v82_v51 = vld [vmem:[%s5914_s1 + $0xd8] sm:$0xff] }
  0xa9   :  { %1822 = vmatpush1.bf16.msra.mxu0 %v3948_v6  ;;  %v4013_v6 = vcombine.high %v137_v57, %v141_v60  ;;  %v86_v52 = vld [vmem:[%s5914_s1 + $0xf8] sm:$0xff] }
  0xaa   :  { %1823 = vmatprep.subr.bf16.mxu0 %v3941_v10  ;;  %v4012_v10 = vcombine.low %v137_v57, %v141_v60  ;;  %v214_v57 = vld [vmem:[%s5914_s1 + $0x4f8] sm:$0xff]  ;;  %v3966_v60 = vcombine.low %v90_v43, %v94_v44 }
  0xab   :  { %1863 = vmatpush1.bf16.msra.mxu1 %v4076_v9  ;;  %v4141_v9 = vcombine.high %v265_v63, %v269_v0 }
  0xac   :  { %1864 = vmatprep.subr.bf16.mxu1 %v4069_v13  ;;  %v4140_v13 = vcombine.low %v265_v63, %v269_v0  ;;  %v74_v0 = vld [vmem:[%s5914_s1 + $0x98] sm:$0xff] }
  0xad   :  { %1824 = vmatpush1.bf16.msra.mxu0 %v3940_v14  ;;  %v4005_v14 = vcombine.high %v129_v3, %v133_v4 }
  0xae   :  { %1825 = vmatprep.subr.bf16.mxu0 %v3933_v20  ;;  %v4004_v20 = vcombine.low %v129_v3, %v133_v4  ;;  %v206_v3 = vld [vmem:[%s5914_s1 + $0x4b8] sm:$0xff]  ;;  %v3958_v4 = vcombine.low %v82_v51, %v86_v52 }
  0xaf   :  { %1865 = vmatpush1.bf16.msra.mxu1 %v4068_v18  ;;  %v4133_v18 = vcombine.high %v257_v7, %v261_v8 }
  0xb0   :  { %1866 = vmatprep.subr.bf16.mxu1 %v4061_v53  ;;  %v4132_v53 = vcombine.low %v257_v7, %v261_v8  ;;  %v66_v8 = vld [vmem:[%s5914_s1 + $0x58] sm:$0xff] }
  0xb1   :  { %1826 = vmatpush1.bf16.msra.mxu0 %v3932_v23  ;;  %v3997_v23 = vcombine.high %v121_v11, %v125_v12 }
  0xb2   :  { %1827 = vmatprep.subr.bf16.mxu0 %v4053_v26  ;;  %v3996_v26 = vcombine.low %v121_v11, %v125_v12  ;;  %v198_v11 = vld [vmem:[%s5914_s1 + $0x478] sm:$0xff] }
  0xb3   :  { %1867 = vmatpush1.bf16.msra.mxu1 %v4060_v25  ;;  %v4125_v25 = vcombine.high %v249_v15, %v253_v17 }
  0xb4   :  { %1868 = vmatprep.subr.bf16.mxu1 %v4181_v29  ;;  %v4124_v29 = vcombine.low %v249_v15, %v253_v17  ;;  %v58_v17 = vld [vmem:[%s5914_s1 + $0x18] sm:$0xff] }
  0xb5   :  { %1828 = vmatpush2.bf16.msra.mxu0 %v4052_v30  ;;  %v3991_v30 = vcombine.high %v114_v21, %v118_v22 }
  0xb6   :  { %1829 = vmatprep.subr.bf16.mxu0 %v4045_v34  ;;  %v3990_v34 = vcombine.low %v114_v21, %v118_v22  ;;  %v190_v21 = vld [vmem:[%s5914_s1 + $0x438] sm:$0xff] }
  0xb7   :  { %1869 = vmatpush2.bf16.msra.mxu1 %v4180_v33  ;;  %v4119_v33 = vcombine.high %v242_v24, %v246_v54  ;;  %v178_v54 = vld [vmem:[%s5914_s1 + $0x3d8] sm:$0xff] }
  0xb8   :  { %1870 = vmatprep.subr.bf16.mxu1 %v4173_v37  ;;  %v3983_v37 = vcombine.high %v106_v27, %v110_v28 }
  0xb9   :  { %1830 = vmatpush2.bf16.msra.mxu0 %v4044_v38  ;;  %v4111_v38 = vcombine.high %v234_v31, %v238_v32 }
  0xba   :  { %1831 = vmatprep.subr.bf16.mxu0 %v4037_v42  ;;  %v3982_v42 = vcombine.low %v106_v27, %v110_v28  ;;  %v310_v27 = vld [vmem:[%s5914_s1 + $0x7f8] sm:$0xff] }
  0xbb   :  { %1871 = vmatpush2.bf16.msra.mxu1 %v4172_v41  ;;  %v230_v41 = vld [vmem:[%s5914_s1 + $0x578] sm:$0xff] }
  0xbc   :  { %1872 = vmatprep.subr.bf16.mxu1 %v4165_v45  ;;  %v4110_v45 = vcombine.low %v234_v31, %v238_v32  ;;  %v4103_v47 = vcombine.high %v226_v40, %v230_v41  ;;  %v170_v32 = vld [vmem:[%s5914_s1 + $0x398] sm:$0xff] }
  0xbd   :  { %1832 = vmatpush2.bf16.msra.mxu0 %v4036_v46  ;;  %v3975_v46 = vcombine.high %v98_v35, %v102_v39 }
  0xbe   :  { %1833 = vmatprep.subr.bf16.mxu0 %v4029_v50  ;;  %v3974_v50 = vcombine.low %v98_v35, %v102_v39  ;;  %v302_v35 = vld [vmem:[%s5914_s1 + $0x7b8] sm:$0xff] }
  0xbf   :  { %1873 = vmatpush2.bf16.msra.mxu1 %v4164_v49  ;;  %v222_v49 = vld [vmem:[%s5914_s1 + $0x538] sm:$0xff] }
  0xc0   :  { %1874 = vmatprep.subr.bf16.mxu1 %v4157_v55  ;;  %v4102_v55 = vcombine.low %v226_v40, %v230_v41  ;;  %v162_v40 = vld [vmem:[%s5914_s1 + $0x358] sm:$0xff] }
  0xc1   :  { %1834 = vmatpush2.bf16.msra.mxu0 %v4028_v56  ;;  %v4095_v56 = vcombine.high %v218_v48, %v222_v49  ;;  %v166_v41 = vld [vmem:[%s5914_s1 + $0x378] sm:$0xff] }
  0xc2   :  { %1835 = vmatprep.subr.bf16.mxu0 %v4021_v62  ;;  %v3959_v62 = vcombine.high %v82_v51, %v86_v52  ;;  %v286_v51 = vld [vmem:[%s5914_s1 + $0x738] sm:$0xff]  ;;  %v4038_v52 = vcombine.low %v162_v40, %v166_v41 }
  0xc3   :  { %1875 = vmatpush2.bf16.msra.mxu1 %v4156_v61  ;;  %v4094_v61 = vcombine.low %v218_v48, %v222_v49  ;;  %v154_v48 = vld [vmem:[%s5914_s1 + $0x318] sm:$0xff] }
  0xc4   :  { %1876 = vmatprep.subr.bf16.mxu1 %v4149_v1  ;;  %v78_v1 = vld [vmem:[%s5914_s1 + $0xb8] sm:$0xff] }
  0xc5   :  { %1836 = vmatpush2.bf16.msra.mxu0 %v4020_v2  ;;  %v202_v2 = vld [vmem:[%s5914_s1 + $0x498] sm:$0xff]  ;;  %v3950_v12 = vcombine.low %v74_v0, %v78_v1 }
  0xc6   :  { %1837 = vmatprep.subr.bf16.mxu0 %v4013_v6  ;;  %v3951_v6 = vcombine.high %v74_v0, %v78_v1  ;;  %v4079_v7 = vcombine.high %v202_v2, %v206_v3  ;;  %v158_v49 = vld [vmem:[%s5914_s1 + $0x338] sm:$0xff] }
  0xc7   :  { %1877 = vmatpush2.bf16.msra.mxu1 %v4148_v5 }
  0xc8   :  { %1878 = vmatprep.subr.bf16.mxu1 %v4141_v9  ;;  %v70_v9 = vld [vmem:[%s5914_s1 + $0x78] sm:$0xff] }
  0xc9   :  { %1838 = vmatpush2.bf16.msra.mxu0 %v4012_v10  ;;  %v194_v10 = vld [vmem:[%s5914_s1 + $0x458] sm:$0xff]  ;;  %v3942_v22 = vcombine.low %v66_v8, %v70_v9 }
  0xca   :  { %1839 = vmatprep.subr.bf16.mxu0 %v4005_v14  ;;  %v3943_v14 = vcombine.high %v66_v8, %v70_v9  ;;  %v4071_v15 = vcombine.high %v194_v10, %v198_v11 }
  0xcb   :  { %1879 = vmatpush2.bf16.msra.mxu1 %v4140_v13  ;;  %v4078_v13 = vcombine.low %v202_v2, %v206_v3  ;;  %v138_v2 = vld [vmem:[%s5914_s1 + $0x298] sm:$0xff] }
  0xcc   :  { %1880 = vmatprep.subr.bf16.mxu1 %v4133_v18  ;;  %v62_v18 = vld [vmem:[%s5914_s1 + $0x38] sm:$0xff] }
  0xcd   :  { %1840 = vmatpush2.bf16.msra.mxu0 %v4004_v20  ;;  %v186_v20 = vld [vmem:[%s5914_s1 + $0x418] sm:$0xff]  ;;  %v3934_v28 = vcombine.low %v58_v17, %v62_v18 }
  0xce   :  { %1841 = vmatprep.subr.bf16.mxu0 %v3997_v23  ;;  %v3935_v23 = vcombine.high %v58_v17, %v62_v18  ;;  %v4063_v24 = vcombine.high %v186_v20, %v190_v21  ;;  %v142_v3 = vld [vmem:[%s5914_s1 + $0x2b8] sm:$0xff] }
  0xcf   :  { %1881 = vmatpush2.bf16.msra.mxu1 %v4132_v53  ;;  %v4070_v53 = vcombine.low %v194_v10, %v198_v11  ;;  %v4015_v8 = vcombine.high %v138_v2, %v142_v3  ;;  %v130_v10 = vld [vmem:[%s5914_s1 + $0x258] sm:$0xff] }
  0xd0   :  { %1882 = vmatprep.subr.bf16.mxu1 %v4125_v25  ;;  %v182_v25 = vld [vmem:[%s5914_s1 + $0x3f8] sm:$0xff] }
  0xd1   :  { %1842 = vmatpush2.bf16.msra.mxu0 %v3996_v26  ;;  %v306_v26 = vld [vmem:[%s5914_s1 + $0x7d8] sm:$0xff] }
  0xd2   :  { %1893 = vmatprep.subr.bf16.mxu0 %v3991_v30  ;;  %v4055_v30 = vcombine.high %v178_v54, %v182_v25  ;;  %v4183_v31 = vcombine.high %v306_v26, %v310_v27  ;;  %v134_v11 = vld [vmem:[%s5914_s1 + $0x278] sm:$0xff] }
  0xd3   :  { %1883 = vmatpush2.bf16.msra.mxu1 %v4124_v29  ;;  %v4062_v29 = vcombine.low %v186_v20, %v190_v21  ;;  %v4007_v18 = vcombine.high %v130_v10, %v134_v11  ;;  %v122_v21 = vld [vmem:[%s5914_s1 + $0x218] sm:$0xff] }
  0xd4   :  { %1934 = vmatprep.subr.bf16.mxu1 %v4119_v33  ;;  %1844 = vmatmul.mubr.bf16.vlgmr.msra.gmra.mxu0 %v5185_v16  ;;  %v174_v33 = vld [vmem:[%s5914_s1 + $0x3b8] sm:$0xff] }
  0xd5   :  { %1894 = vmatpush1.bf16.msra.mxu0 %v3990_v34  ;;  %1925 = vmatprep.mubr.bf16.mxu0 %v5055_v58  ;;  %v3967_v58 = vcombine.high %v90_v43, %v94_v44  ;;  %v298_v34 = vld [vmem:[%s5914_s1 + $0x798] sm:$0xff]  ;;  %v4046_v44 = vcombine.low %v170_v32, %v174_v33 }
  0xd6   :  { %1885 = vmatmul.mubr.bf16.vlgmr.msra.gmra.mxu1 %v5195_v19  ;;  %1895 = vmatprep.subr.bf16.mxu0 %v3983_v37  ;;  %v4182_v37 = vcombine.low %v306_v26, %v310_v27  ;;  %v4175_v39 = vcombine.high %v298_v34, %v302_v35  ;;  %v294_v43 = vld [vmem:[%s5914_s1 + $0x778] sm:$0xff] }
  0xd7   :  { %1935 = vmatpush1.bf16.msra.mxu1 %v4118_v36  ;;  %1966 = vmatprep.mubr.bf16.mxu1 %v5059_v59  ;;  %v210_v59 = vld [vmem:[%s5914_s1 + $0x4d8] sm:$0xff]  ;;  %v4054_v36 = vcombine.low %v178_v54, %v182_v25 }
  0xd8   :  { %1936 = vmatprep.subr.bf16.mxu1 %v4111_v38  ;;  %v4087_v63 = vcombine.high %v210_v59, %v214_v57  ;;  %v4086_v5 = vcombine.low %v210_v59, %v214_v57  ;;  %v4047_v38 = vcombine.high %v170_v32, %v174_v33  ;;  %v146_v59 = vld [vmem:[%s5914_s1 + $0x2d8] sm:$0xff] }
  0xd9   :  { %1896 = vmatpush1.bf16.msra.mxu0 %v3982_v42  ;;  %v290_v42 = vld [vmem:[%s5914_s1 + $0x758] sm:$0xff] }
  0xda   :  { %1897 = vmatprep.subr.bf16.mxu0 %v3975_v46  ;;  %v4039_v46 = vcombine.high %v162_v40, %v166_v41  ;;  %v150_v57 = vld [vmem:[%s5914_s1 + $0x2f8] sm:$0xff]  ;;  %v4533_v40 = vld [vmem:[#allocation2 + $0x214] ss:$12 sps:$4 sm:$0xff]  }
  0xdb   :  { %1937 = vmatpush1.bf16.msra.mxu1 %v4110_v45  ;;  %v4174_v45 = vcombine.low %v298_v34, %v302_v35  ;;  %v4023_v0 = vcombine.high %v146_v59, %v150_v57  ;;  %v4515_v32 = vld [vmem:[#allocation2 + $0xac] ss:$12 sps:$4 sm:$0xff]  }
  0xdc   :  { %1938 = vmatprep.subr.bf16.mxu1 %v4103_v47  ;;  %v4167_v47 = vcombine.high %v290_v42, %v294_v43  ;;  %v4527_v34 = vld [vmem:[#allocation2 + $0x22c] ss:$12 sps:$4 sm:$0xff]  }
  0xdd   :  { %1898 = vmatpush1.bf16.msra.mxu0 %v3974_v50  ;;  %v282_v50 = vld [vmem:[%s5914_s1 + $0x718] sm:$0xff] }
  0xde   :  { %1899 = vmatprep.subr.bf16.mxu0 %v3967_v58  ;;  %v4031_v58 = vcombine.high %v154_v48, %v158_v49 }
  0xdf   :  { %1939 = vmatpush1.bf16.msra.mxu1 %v4102_v55  ;;  %v4166_v55 = vcombine.low %v290_v42, %v294_v43 }
  0xe0   :  { %1940 = vmatprep.subr.bf16.mxu1 %v4095_v56  ;;  %v4159_v56 = vcombine.high %v282_v50, %v286_v51 }
  0xe1   :  { %1900 = vmatpush1.bf16.msra.mxu0 %v3966_v60  ;;  %v274_v60 = vld [vmem:[%s5914_s1 + $0x6d8] sm:$0xff] }
  0xe2   :  { %1901 = vmatprep.subr.bf16.mxu0 %v3959_v62  ;;  %v4030_v62 = vcombine.low %v154_v48, %v158_v49 }
  0xe3   :  { %1941 = vmatpush1.bf16.msra.mxu1 %v4094_v61  ;;  %v278_v61 = vld [vmem:[%s5914_s1 + $0x6f8] sm:$0xff] }
  0xe4   :  { %1942 = vmatprep.subr.bf16.mxu1 %v4087_v63  ;;  %v4158_v63 = vcombine.low %v282_v50, %v286_v51  ;;  %v4151_v1 = vcombine.high %v274_v60, %v278_v61  ;;  %v4539_v51 = vld [vmem:[#allocation2 + $0x1fc] ss:$12 sps:$4 sm:$0xff]  }
  0xe5   :  { %1902 = vmatpush1.bf16.msra.mxu0 %v3958_v4  ;;  %v266_v4 = vld [vmem:[%s5914_s1 + $0x698] sm:$0xff] }
  0xe6   :  { %1903 = vmatprep.subr.bf16.mxu0 %v3951_v6  ;;  %v4022_v6 = vcombine.low %v146_v59, %v150_v57  ;;  %v4524_v59 = vld [vmem:[#allocation2 + $0x64] ss:$12 sps:$4 sm:$0xff]  }
  0xe7   :  { %1943 = vmatpush1.bf16.msra.mxu1 %v4086_v5  ;;  %v270_v5 = vld [vmem:[%s5914_s1 + $0x6b8] sm:$0xff]  ;;  %v4537_v57 = vld [vmem:[#allocation2 + $0x1f8] ss:$12 sps:$4 sm:$0xff]  }
  0xe8   :  { %1944 = vmatprep.subr.bf16.mxu1 %v4079_v7  ;;  %v4150_v7 = vcombine.low %v274_v60, %v278_v61  ;;  %v4143_v9 = vcombine.high %v266_v4, %v270_v5  ;;  %v4142_v17 = vcombine.low %v266_v4, %v270_v5  ;;  %v4528_v4 = vld [vmem:[#allocation2 + $0x48] ss:$12 sps:$4 sm:$0xff]  }
  0xe9   :  { %1904 = vmatpush1.bf16.msra.mxu0 %v3950_v12  ;;  %v258_v12 = vld [vmem:[%s5914_s1 + $0x658] sm:$0xff]  ;;  %v4536_v5 = vld [vmem:[#allocation2 + $0x34] ss:$12 sps:$4 sm:$0xff]  }
  0xea   :  { %1905 = vmatprep.subr.bf16.mxu0 %v3943_v14  ;;  %v4014_v14 = vcombine.low %v138_v2, %v142_v3  ;;  %v4543_v2 = vld [vmem:[#allocation2 + $0x1e0] ss:$12 sps:$4 sm:$0xff]  }
  0xeb   :  { %1945 = vmatpush1.bf16.msra.mxu1 %v4078_v13  ;;  %v262_v13 = vld [vmem:[%s5914_s1 + $0x678] sm:$0xff] }
  0xec   :  { %1946 = vmatprep.subr.bf16.mxu1 %v4071_v15  ;;  %v313_v15 = vlaneseq  ;;  %v4135_v20 = vcombine.high %v258_v12, %v262_v13  ;;  %v4134_v25 = vcombine.low %v258_v12, %v262_v13  ;;  %v4551_v3 = vld [vmem:[#allocation2 + $0x1cc] ss:$12 sps:$4 sm:$0xff]   ;;  %v4548_v13 = vld [vmem:[#allocation2 + $0x4] ss:$12 sps:$4 sm:$0xff]  }
  0xed   :  { %1906 = vmatpush1.bf16.msra.mxu0 %v3942_v22  ;;  %v126_v22 = vld [vmem:[%s5914_s1 + $0x238] sm:$0xff]  ;;  %v4540_v12 = vld [vmem:[#allocation2 + $0x18] ss:$12 sps:$4 sm:$0xff]  }
  0xee   :  { %1907 = vmatprep.subr.bf16.mxu0 %v3935_v23  ;;  %v254_v23 = vld [vmem:[%s5914_s1 + $0x638] sm:$0xff]  ;;  %v5761_v54 = vshrl.u32 %v313_v15, 7  ;;  %v3999_v26 = vcombine.high %v122_v21, %v126_v22  ;;  %v4569_v15 = vld [vmem:[#allocation2 + $0x184] ss:$12 sps:$4 sm:$0xff]  }
  0xef   :  { %1947 = vmatpush1.bf16.msra.mxu1 %v4070_v53  ;;  %v250_v53 = vld [vmem:[%s5914_s1 + $0x618] sm:$0xff] }
  0xf0   :  { %1948 = vmatprep.subr.bf16.mxu1 %v4063_v24  ;;  %v4006_v24 = vcombine.low %v130_v10, %v134_v11  ;;  %v4127_v27 = vcombine.high %v250_v53, %v254_v23  ;;  %v5772_v33 = vsub.s32 1, %v5761_v54  ;;  %v4555_v10 = vld [vmem:[#allocation2 + $0x1b0] ss:$12 sps:$4 sm:$0xff]  }
  0xf1   :  { %1908 = vmatpush1.bf16.msra.mxu0 %v3934_v28  ;;  %v3998_v28 = vcombine.low %v122_v21, %v126_v22  ;;  %v4563_v11 = vld [vmem:[#allocation2 + $0x19c] ss:$12 sps:$4 sm:$0xff]   ;;  %v4575_v21 = vld [vmem:[#allocation2 + $0x2ec] ss:$12 sps:$4 sm:$0xff]  }
  0xf2   :  { %1909 = vmatprep.subr.bf16.mxu0 %v4055_v30  ;;  %v4126_v30 = vcombine.low %v250_v53, %v254_v23  ;;  %v4552_v22 = vld [vmem:[#allocation2 + $0x168] ss:$12 sps:$4 sm:$0xff]  }
  0xf3   :  { %1949 = vmatpush1.bf16.msra.mxu1 %v4062_v29  ;;  %v5764_v29 = vsub.s32 0, %v5761_v54  ;;  %v4560_v53 = vld [vmem:[#allocation2 + $0x154] ss:$12 sps:$4 sm:$0xff]  }
  0xf4   :  { %1950 = vmatprep.subr.bf16.mxu1 %v4183_v31  ;;  %v5769_v31 = vld [vmem:[%s5915_s2] sm:$0xff] }
  0xf5   :  { %1910 = vmatpush2.bf16.msra.mxu0 %v4054_v36  ;;  %v316_v35 = vrot.slane %v5769_v31, %v5764_v29  ;;  %v4513_v36 = vld [vmem:[#allocation2 + $0xa8] ss:$12 sps:$4 sm:$0xff]  }
  0xf6   :  { %1911 = vmatprep.subr.bf16.mxu0 %v4047_v38  ;;  %v4525_v38 = vld [vmem:[#allocation2 + $0x228] ss:$12 sps:$4 sm:$0xff]  }
  0xf7   :  { %1951 = vmatpush2.bf16.msra.mxu1 %v4182_v37  ;;  %v4518_v37 = vld [vmem:[#allocation2 + $0x94] ss:$12 sps:$4 sm:$0xff]  }
  0xf8   :  { %1952 = vmatprep.subr.bf16.mxu1 %v4175_v39  ;;  %v320_v39 = vrot.slane %v5769_v31, %v5772_v33  ;;  %v4573_v23 = vld [vmem:[#allocation2 + $0x2e8] ss:$12 sps:$4 sm:$0xff]  }
  0xf9   :  { %1912 = vmatpush2.bf16.msra.mxu0 %v4046_v44  ;;  %v4516_v44 = vld [vmem:[#allocation2 + $0x90] ss:$12 sps:$4 sm:$0xff]  }
  0xfa   :  { %1913 = vmatprep.subr.bf16.mxu0 %v4039_v46  ;;  %v4521_v46 = vld [vmem:[#allocation2 + $0x7c] ss:$12 sps:$4 sm:$0xff]  }
  0xfb   :  { %1953 = vmatpush2.bf16.msra.mxu1 %v4174_v45 }
  0xfc   :  { %1954 = vmatprep.subr.bf16.mxu1 %v4167_v47  ;;  %v4531_v47 = vld [vmem:[#allocation2 + $0x210] ss:$12 sps:$4 sm:$0xff]  }
  0xfd   :  { %1914 = vmatpush2.bf16.msra.mxu0 %v4038_v52 }
  0xfe   :  { %1915 = vmatprep.subr.bf16.mxu0 %v4031_v58 }
  0xff   :  { %1955 = vmatpush2.bf16.msra.mxu1 %v4166_v55 }
 0x100   :  { %1956 = vmatprep.subr.bf16.mxu1 %v4159_v56  ;;  %v4519_v56 = vld [vmem:[#allocation2 + $0x78] ss:$12 sps:$4 sm:$0xff]  }
 0x101   :  { %1916 = vmatpush2.bf16.msra.mxu0 %v4030_v62  ;;  %v4545_v62 = vld [vmem:[#allocation2 + $0x1e4] ss:$12 sps:$4 sm:$0xff]  }
 0x102   :  { %1917 = vmatprep.subr.bf16.mxu0 %v4023_v0  ;;  %v4522_v0 = vld [vmem:[#allocation2 + $0x60] ss:$12 sps:$4 sm:$0xff]  }
 0x103   :  { %1957 = vmatpush2.bf16.msra.mxu1 %v4158_v63 }
 0x104   :  { %1958 = vmatprep.subr.bf16.mxu1 %v4151_v1  ;;  %v4530_v1 = vld [vmem:[#allocation2 + $0x4c] ss:$12 sps:$4 sm:$0xff]  }
 0x105   :  { %1918 = vmatpush2.bf16.msra.mxu0 %v4022_v6  ;;  %v4549_v6 = vld [vmem:[#allocation2 + $0x1c8] ss:$12 sps:$4 sm:$0xff]  }
 0x106   :  { %1919 = vmatprep.subr.bf16.mxu0 %v4015_v8  ;;  %v4534_v8 = vld [vmem:[#allocation2 + $0x30] ss:$12 sps:$4 sm:$0xff]  }
 0x107   :  { %1959 = vmatpush2.bf16.msra.mxu1 %v4150_v7  ;;  %v4557_v7 = vld [vmem:[#allocation2 + $0x1b4] ss:$12 sps:$4 sm:$0xff]  }
 0x108   :  { %1960 = vmatprep.subr.bf16.mxu1 %v4143_v9  ;;  %v4542_v9 = vld [vmem:[#allocation2 + $0x1c] ss:$12 sps:$4 sm:$0xff]  }
 0x109   :  { %1920 = vmatpush2.bf16.msra.mxu0 %v4014_v14  ;;  %v4561_v14 = vld [vmem:[#allocation2 + $0x198] ss:$12 sps:$4 sm:$0xff]  }
 0x10a   :  { %1921 = vmatprep.subr.bf16.mxu0 %v4007_v18  ;;  %v4554_v18 = vld [vmem:[#allocation2 + $0x16c] ss:$12 sps:$4 sm:$0xff]  }
 0x10b   :  { %1961 = vmatpush2.bf16.msra.mxu1 %v4142_v17  ;;  %v4546_v17 = vld [vmem:[#allocation2] ss:$12 sps:$4 sm:$0xff]  }
 0x10c   :  { %1962 = vmatprep.subr.bf16.mxu1 %v4135_v20  ;;  %v4567_v20 = vld [vmem:[#allocation2 + $0x180] ss:$12 sps:$4 sm:$0xff]  }
 0x10d   :  { %1922 = vmatpush2.bf16.msra.mxu0 %v4006_v24  ;;  %v4581_v24 = vld [vmem:[#allocation2 + $0x2d4] ss:$12 sps:$4 sm:$0xff]  }
 0x10e   :  { %1923 = vmatprep.subr.bf16.mxu0 %v3999_v26  ;;  %v4566_v26 = vld [vmem:[#allocation2 + $0x13c] ss:$12 sps:$4 sm:$0xff]  }
 0x10f   :  { %1963 = vmatpush2.bf16.msra.mxu1 %v4134_v25  ;;  %v4558_v25 = vld [vmem:[#allocation2 + $0x150] ss:$12 sps:$4 sm:$0xff]  }
 0x110   :  { %1964 = vmatprep.subr.bf16.mxu1 %v4127_v27  ;;  %v4579_v27 = vld [vmem:[#allocation2 + $0x2d0] ss:$12 sps:$4 sm:$0xff]  }
 0x111   :  { %1924 = vmatpush2.bf16.msra.mxu0 %v3998_v28  ;;  %v4587_v28 = vld [vmem:[#allocation2 + $0x2bc] ss:$12 sps:$4 sm:$0xff]  }
 0x112   :  { %3296 = vmatprep.subr.bf16.mxu0 %v4515_v32  ;;  %v4572_v32 = vld [vmem:[#allocation2 + $0x124] ss:$12 sps:$4 sm:$0xff]  }
 0x113   :  { %1965 = vmatpush2.bf16.msra.mxu1 %v4126_v30  ;;  %v4564_v30 = vld [vmem:[#allocation2 + $0x138] ss:$12 sps:$4 sm:$0xff]  }
 0x114   :  { %3337 = vmatprep.subr.bf16.mxu1 %v4527_v34  ;;  %v1681_v41 = vpop.f32.mrf.mxu0  ;;  %1926 = vmatmul.mubr.bf16.vlgmr.msra.gmra.mxu0 %v5185_v16  ;;  %v4585_v34 = vld [vmem:[#allocation2 + $0x2b8] ss:$12 sps:$4 sm:$0xff]  }
 0x115   :  { %v1682_v42 = vadd.f32 %v1681_v41, %v316_v35  ;;  %3297 = vmatpush1.bf16.msra.mxu0 %v4513_v36  ;;  %v4593_v35 = vld [vmem:[#allocation2 + $0x2a4] ss:$12 sps:$4 sm:$0xff]   ;;  %v4570_v36 = vld [vmem:[#allocation2 + $0x120] ss:$12 sps:$4 sm:$0xff]  }
 0x116   :  { %v1722_v43 = vpop.f32.mrf.mxu1  ;;  %1967 = vmatmul.mubr.bf16.vlgmr.msra.gmra.mxu1 %v5195_v19  ;;  %v1683_v45 = vpop.f32.mrf.mxu0  ;;  %3298 = vmatprep.subr.bf16.mxu0 %v4518_v37  ;;  %v4578_v37 = vld [vmem:[#allocation2 + $0x10c] ss:$12 sps:$4 sm:$0xff]   ;;  %v4584_v41 = vld [vmem:[#allocation2 + $0xf4] ss:$12 sps:$4 sm:$0xff]  }
 0x117   :  { %3338 = vmatpush1.bf16.msra.mxu1 %v4525_v38  ;;  %v1723_v48 = vadd.f32 %v1722_v43, %v1682_v42  ;;  %v1684_v49 = vadd.f32 %v1683_v45, %v320_v39  ;;  %v4591_v38 = vld [vmem:[#allocation2 + $0x2a0] ss:$12 sps:$4 sm:$0xff]   ;;  %v4597_v42 = vld [vmem:[#allocation2 + $0x288] ss:$12 sps:$4 sm:$0xff]  }
 0x118   :  { %v1724_v50 = vpop.f32.mrf.mxu1  ;;  %3339 = vmatprep.subr.bf16.mxu1 %v4533_v40  ;;  %v1685_v52 = vpop.f32.mrf.mxu0  ;;  %v4599_v39 = vld [vmem:[#allocation2 + $0x28c] ss:$12 sps:$4 sm:$0xff]   ;;  %v4576_v40 = vld [vmem:[#allocation2 + $0x108] ss:$12 sps:$4 sm:$0xff]  }
 0x119   :  { %v5780_v55 = vmax.f32 %v1723_v48, 0.0  ;;  %v1725_v16 = vadd.f32 %v1724_v50, %v1684_v49  ;;  %3299 = vmatpush1.bf16.msra.mxu0 %v4516_v44  ;;  %v4602_v43 = vld [vmem:[#allocation2 + $0x274] ss:$12 sps:$4 sm:$0xff]   ;;  %v4582_v44 = vld [vmem:[#allocation2 + $0xf0] ss:$12 sps:$4 sm:$0xff]  }
 0x11a   :  { %v1726_v58 = vpop.f32.mrf.mxu1  ;;  %v1686_v19 = vpop.f32.mrf.mxu0  ;;  %3300 = vmatprep.subr.bf16.mxu0 %v4521_v46  ;;  %v4590_v45 = vld [vmem:[#allocation2 + $0xdc] ss:$12 sps:$4 sm:$0xff]   ;;  %v4588_v48 = vld [vmem:[#allocation2 + $0xd8] ss:$12 sps:$4 sm:$0xff]   ;;  %v4594_v52 = vld [vmem:[#allocation2 + $0xc0] ss:$12 sps:$4 sm:$0xff]  }
 0x11b   :  { %3340 = vmatpush1.bf16.msra.mxu1 %v4531_v47  ;;  %1983 = vst [vmem:[#allocation5] sm:$0xff] %v5780_v55  ;;  %v1976_v60 = vmax.f32 %v1725_v16, 0.0  ;;  %v4600_v46 = vld [vmem:[#allocation2 + $0x270] ss:$12 sps:$4 sm:$0xff]   ;;  %v4603_v50 = vld [vmem:[#allocation2 + $0x258] ss:$12 sps:$4 sm:$0xff]  }
 0x11c   :  { %v1727_v61 = vpop.f32.mrf.mxu1  ;;  %3341 = vmatprep.subr.bf16.mxu1 %v4539_v51  ;;  %v4605_v47 = vld [vmem:[#allocation2 + $0x25c] ss:$12 sps:$4 sm:$0xff]   ;;  %v4596_v49 = vld [vmem:[#allocation2 + $0xc4] ss:$12 sps:$4 sm:$0xff]   ;;  %v323_v16 = vsub.s32 2, %v5761_v54  ;;  %v327_v19 = vsub.s32 3, %v5761_v54 }
 0x11d   :  { %1984 = vst [vmem:[#allocation5 + $0x8] sm:$0xff] %v1976_v60  ;;  %v5783_v63 = vpack.c.bf16 %v1976_v60, %v1976_v60  ;;  %3301 = vmatpush1.bf16.msra.mxu0 %v4519_v56  ;;  %v4608_v51 = vld [vmem:[#allocation2 + $0x244] ss:$12 sps:$4 sm:$0xff]   ;;  %v4606_v58 = vld [vmem:[#allocation2 + $0x240] ss:$12 sps:$4 sm:$0xff]   ;;  %v5793_v61 = vpack.c.bf16 %v5780_v55, %v5780_v55 }
 0x11e   :  { %3302 = vmatprep.subr.bf16.mxu0 %v4524_v59  ;;  %v4611_v56 = vld [vmem:[#allocation2 + $0x3ac] ss:$12 sps:$4 sm:$0xff]   ;;  %v4609_v60 = vld [vmem:[#allocation2 + $0x3a8] ss:$12 sps:$4 sm:$0xff]  }
 0x11f   :  { %3342 = vmatpush1.bf16.msra.mxu1 %v4537_v57  ;;  %3328 = vmatprep.mubr.bf16.mxu0 %v5783_v63  ;;  %v4659_v59 = vld [vmem:[#allocation2 + $0x52c] ss:$12 sps:$4 sm:$0xff]   ;;  %v324_v57 = vrot.slane %v5769_v31, %v323_v16 }
 0x120   :  { %3343 = vmatprep.subr.bf16.mxu1 %v4545_v62  ;;  %v4614_v62 = vld [vmem:[#allocation2 + $0x394] ss:$12 sps:$4 sm:$0xff]  }
 0x121   :  { %3303 = vmatpush1.bf16.msra.mxu0 %v4522_v0  ;;  %v328_v0 = vrot.slane %v5769_v31, %v327_v19  ;;  %v4699_v19 = vld [vmem:[#allocation2 + $0x5ec] ss:$12 sps:$4 sm:$0xff]  }
 0x122   :  { %3304 = vmatprep.subr.bf16.mxu0 %v4530_v1 }
 0x123   :  { %3344 = vmatpush1.bf16.msra.mxu1 %v4543_v2 }
 0x124   :  { %3345 = vmatprep.subr.bf16.mxu1 %v4551_v3 }
 0x125   :  { %3305 = vmatpush1.bf16.msra.mxu0 %v4528_v4  ;;  %v4612_v4 = vld [vmem:[#allocation2 + $0x390] ss:$12 sps:$4 sm:$0xff]  }
 0x126   :  { %3306 = vmatprep.subr.bf16.mxu0 %v4536_v5 }
 0x127   :  { %3346 = vmatpush1.bf16.msra.mxu1 %v4549_v6  ;;  %v4617_v6 = vld [vmem:[#allocation2 + $0x37c] ss:$12 sps:$4 sm:$0xff]  }
 0x128   :  { %3347 = vmatprep.subr.bf16.mxu1 %v4557_v7 }
 0x129   :  { %3307 = vmatpush1.bf16.msra.mxu0 %v4534_v8 }
 0x12a   :  { %3308 = vmatprep.subr.bf16.mxu0 %v4542_v9 }
 0x12b   :  { %3348 = vmatpush1.bf16.msra.mxu1 %v4555_v10 }
 0x12c   :  { %3349 = vmatprep.subr.bf16.mxu1 %v4563_v11 }
 0x12d   :  { %3309 = vmatpush1.bf16.msra.mxu0 %v4540_v12 }
 0x12e   :  { %3310 = vmatprep.subr.bf16.mxu0 %v4548_v13  ;;  %v4615_v13 = vld [vmem:[#allocation2 + $0x378] ss:$12 sps:$4 sm:$0xff]  }
 0x12f   :  { %3350 = vmatpush1.bf16.msra.mxu1 %v4561_v14 }
 0x130   :  { %3351 = vmatprep.subr.bf16.mxu1 %v4569_v15  ;;  %v4620_v15 = vld [vmem:[#allocation2 + $0x364] ss:$12 sps:$4 sm:$0xff]  }
 0x131   :  { %3311 = vmatpush1.bf16.msra.mxu0 %v4546_v17 }
 0x132   :  { %3312 = vmatprep.subr.bf16.mxu0 %v4554_v18 }
 0x133   :  { %3352 = vmatpush1.bf16.msra.mxu1 %v4567_v20 }
 0x134   :  { %3353 = vmatprep.subr.bf16.mxu1 %v4575_v21  ;;  %v4618_v21 = vld [vmem:[#allocation2 + $0x360] ss:$12 sps:$4 sm:$0xff]  }
 0x135   :  { %3313 = vmatpush2.bf16.msra.mxu0 %v4552_v22  ;;  %v4657_v22 = vld [vmem:[#allocation2 + $0x528] ss:$12 sps:$4 sm:$0xff]  }
 0x136   :  { %3314 = vmatprep.subr.bf16.mxu0 %v4560_v53 }
 0x137   :  { %3354 = vmatpush2.bf16.msra.mxu1 %v4573_v23  ;;  %v4623_v23 = vld [vmem:[#allocation2 + $0x34c] ss:$12 sps:$4 sm:$0xff]  }
 0x138   :  { %3355 = vmatprep.subr.bf16.mxu1 %v4581_v24  ;;  %v4664_v24 = vld [vmem:[#allocation2 + $0x514] ss:$12 sps:$4 sm:$0xff]  }
 0x139   :  { %3315 = vmatpush2.bf16.msra.mxu0 %v4558_v25  ;;  %v4621_v25 = vld [vmem:[#allocation2 + $0x348] ss:$12 sps:$4 sm:$0xff]  }
 0x13a   :  { %3316 = vmatprep.subr.bf16.mxu0 %v4566_v26  ;;  %v4662_v26 = vld [vmem:[#allocation2 + $0x510] ss:$12 sps:$4 sm:$0xff]  }
 0x13b   :  { %3356 = vmatpush2.bf16.msra.mxu1 %v4579_v27  ;;  %v4626_v27 = vld [vmem:[#allocation2 + $0x334] ss:$12 sps:$4 sm:$0xff]  }
 0x13c   :  { %3357 = vmatprep.subr.bf16.mxu1 %v4587_v28  ;;  %v4669_v28 = vld [vmem:[#allocation2 + $0x4fc] ss:$12 sps:$4 sm:$0xff]  }
 0x13d   :  { %3317 = vmatpush2.bf16.msra.mxu0 %v4564_v30  ;;  %v4624_v30 = vld [vmem:[#allocation2 + $0x330] ss:$12 sps:$4 sm:$0xff]  }
 0x13e   :  { %3318 = vmatprep.subr.bf16.mxu0 %v4572_v32  ;;  %v4667_v32 = vld [vmem:[#allocation2 + $0x4f8] ss:$12 sps:$4 sm:$0xff]  }
 0x13f   :  { %3358 = vmatpush2.bf16.msra.mxu1 %v4585_v34  ;;  %v4629_v34 = vld [vmem:[#allocation2 + $0x31c] ss:$12 sps:$4 sm:$0xff]  }
 0x140   :  { %3359 = vmatprep.subr.bf16.mxu1 %v4593_v35  ;;  %v4674_v35 = vld [vmem:[#allocation2 + $0x4e4] ss:$12 sps:$4 sm:$0xff]  }
 0x141   :  { %3319 = vmatpush2.bf16.msra.mxu0 %v4570_v36  ;;  %v4627_v36 = vld [vmem:[#allocation2 + $0x318] ss:$12 sps:$4 sm:$0xff]  }
 0x142   :  { %3320 = vmatprep.subr.bf16.mxu0 %v4578_v37  ;;  %v4672_v37 = vld [vmem:[#allocation2 + $0x4e0] ss:$12 sps:$4 sm:$0xff]  }
 0x143   :  { %3360 = vmatpush2.bf16.msra.mxu1 %v4591_v38  ;;  %v4632_v38 = vld [vmem:[#allocation2 + $0x304] ss:$12 sps:$4 sm:$0xff]  }
 0x144   :  { %3361 = vmatprep.subr.bf16.mxu1 %v4599_v39  ;;  %v4679_v39 = vld [vmem:[#allocation2 + $0x4cc] ss:$12 sps:$4 sm:$0xff]  }
 0x145   :  { %3321 = vmatpush2.bf16.msra.mxu0 %v4576_v40  ;;  %v4630_v40 = vld [vmem:[#allocation2 + $0x300] ss:$12 sps:$4 sm:$0xff]  }
 0x146   :  { %3322 = vmatprep.subr.bf16.mxu0 %v4584_v41  ;;  %v4677_v41 = vld [vmem:[#allocation2 + $0x4c8] ss:$12 sps:$4 sm:$0xff]  }
 0x147   :  { %3362 = vmatpush2.bf16.msra.mxu1 %v4597_v42  ;;  %v4635_v42 = vld [vmem:[#allocation2 + $0x46c] ss:$12 sps:$4 sm:$0xff]  }
 0x148   :  { %3363 = vmatprep.subr.bf16.mxu1 %v4602_v43  ;;  %v4684_v43 = vld [vmem:[#allocation2 + $0x4b4] ss:$12 sps:$4 sm:$0xff]  }
 0x149   :  { %3323 = vmatpush2.bf16.msra.mxu0 %v4582_v44  ;;  %v4633_v44 = vld [vmem:[#allocation2 + $0x468] ss:$12 sps:$4 sm:$0xff]  }
 0x14a   :  { %3324 = vmatprep.subr.bf16.mxu0 %v4590_v45  ;;  %v4682_v45 = vld [vmem:[#allocation2 + $0x4b0] ss:$12 sps:$4 sm:$0xff]  }
 0x14b   :  { %3364 = vmatpush2.bf16.msra.mxu1 %v4600_v46  ;;  %v4638_v46 = vld [vmem:[#allocation2 + $0x454] ss:$12 sps:$4 sm:$0xff]  }
 0x14c   :  { %3365 = vmatprep.subr.bf16.mxu1 %v4605_v47  ;;  %v4689_v47 = vld [vmem:[#allocation2 + $0x49c] ss:$12 sps:$4 sm:$0xff]  }
 0x14d   :  { %3325 = vmatpush2.bf16.msra.mxu0 %v4588_v48  ;;  %v4636_v48 = vld [vmem:[#allocation2 + $0x450] ss:$12 sps:$4 sm:$0xff]  }
 0x14e   :  { %3326 = vmatprep.subr.bf16.mxu0 %v4596_v49  ;;  %v4687_v49 = vld [vmem:[#allocation2 + $0x498] ss:$12 sps:$4 sm:$0xff]  }
 0x14f   :  { %3366 = vmatpush2.bf16.msra.mxu1 %v4603_v50  ;;  %v4641_v50 = vld [vmem:[#allocation2 + $0x43c] ss:$12 sps:$4 sm:$0xff]  }
 0x150   :  { %3367 = vmatprep.subr.bf16.mxu1 %v4608_v51  ;;  %v4694_v51 = vld [vmem:[#allocation2 + $0x484] ss:$12 sps:$4 sm:$0xff]  }
 0x151   :  { %3327 = vmatpush2.bf16.msra.mxu0 %v4594_v52  ;;  %v4639_v52 = vld [vmem:[#allocation2 + $0x438] ss:$12 sps:$4 sm:$0xff]  }
 0x152   :  { %3378 = vmatprep.subr.bf16.mxu0 %v4611_v56  ;;  %v4644_v56 = vld [vmem:[#allocation2 + $0x424] ss:$12 sps:$4 sm:$0xff]  }
 0x153   :  { %3368 = vmatpush2.bf16.msra.mxu1 %v4606_v58  ;;  %v4692_v58 = vld [vmem:[#allocation2 + $0x480] ss:$12 sps:$4 sm:$0xff]  }
 0x154   :  { %3419 = vmatprep.subr.bf16.mxu1 %v4659_v59  ;;  %v1763_v1 = vpop.f32.mrf.mxu0  ;;  %3329 = vmatmul.mubr.bf16.vlgmr.msra.gmra.mxu0 %v5793_v61  ;;  %v4642_v59 = vld [vmem:[#allocation2 + $0x420] ss:$12 sps:$4 sm:$0xff]  }
 0x155   :  { %v1764_v2 = vadd.f32 %v1763_v1, %v324_v57  ;;  %3379 = vmatpush1.bf16.msra.mxu0 %v4609_v60  ;;  %v4697_v57 = vld [vmem:[#allocation2 + $0x5e8] ss:$12 sps:$4 sm:$0xff]   ;;  %v4647_v60 = vld [vmem:[#allocation2 + $0x40c] ss:$12 sps:$4 sm:$0xff]   ;;  %v4702_v1 = vld [vmem:[#allocation2 + $0x5d0] ss:$12 sps:$4 sm:$0xff]  }
 0x156   :  { %v1804_v3 = vpop.f32.mrf.mxu1  ;;  %v1765_v5 = vpop.f32.mrf.mxu0  ;;  %3380 = vmatprep.subr.bf16.mxu0 %v4614_v62  ;;  %v4704_v62 = vld [vmem:[#allocation2 + $0x5d4] ss:$12 sps:$4 sm:$0xff]  }
 0x157   :  { %v1805_v7 = vadd.f32 %v1804_v3, %v1764_v2  ;;  %v1766_v8 = vadd.f32 %v1765_v5, %v328_v0  ;;  %v4645_v0 = vld [vmem:[#allocation2 + $0x408] ss:$12 sps:$4 sm:$0xff]   ;;  %v4707_v5 = vld [vmem:[#allocation2 + $0x5b8] ss:$12 sps:$4 sm:$0xff]  }
 0x158   :  { %v1806_v55 = vpop.f32.mrf.mxu1  ;;  %v1767_v9 = vpop.f32.mrf.mxu0  ;;  %v4650_v2 = vld [vmem:[#allocation2 + $0x3f4] ss:$12 sps:$4 sm:$0xff]   ;;  %v4709_v3 = vld [vmem:[#allocation2 + $0x5bc] ss:$12 sps:$4 sm:$0xff]  }
 0x159   :  { %v1977_v10 = vmax.f32 %v1805_v7, 0.0  ;;  %v1807_v11 = vadd.f32 %v1806_v55, %v1766_v8  ;;  %3381 = vmatpush1.bf16.msra.mxu0 %v4612_v4  ;;  %v4648_v4 = vld [vmem:[#allocation2 + $0x3f0] ss:$12 sps:$4 sm:$0xff]   ;;  %v4651_v8 = vld [vmem:[#allocation2 + $0x3d8] ss:$12 sps:$4 sm:$0xff]  }
 0x15a   :  { %v1808_v12 = vpop.f32.mrf.mxu1  ;;  %v1768_v14 = vpop.f32.mrf.mxu0  ;;  %3382 = vmatprep.subr.bf16.mxu0 %v4617_v6  ;;  %v4653_v6 = vld [vmem:[#allocation2 + $0x3dc] ss:$12 sps:$4 sm:$0xff]   ;;  %v4714_v7 = vld [vmem:[#allocation2 + $0x5a4] ss:$12 sps:$4 sm:$0xff]   ;;  %v4712_v55 = vld [vmem:[#allocation2 + $0x5a0] ss:$12 sps:$4 sm:$0xff]  }
 0x15b   :  { %1985 = vst [vmem:[#allocation5 + $0x10] sm:$0xff] %v1977_v10  ;;  %v1978_v17 = vmax.f32 %v1807_v11, 0.0  ;;  %v5799_v53 = vpack.c.bf16 %v1977_v10, %v1977_v10  ;;  %v4656_v9 = vld [vmem:[#allocation2 + $0x3c4] ss:$12 sps:$4 sm:$0xff]   ;;  %v4719_v10 = vld [vmem:[#allocation2 + $0x58c] ss:$12 sps:$4 sm:$0xff]  }
 0x15c   :  { %v1809_v18 = vpop.f32.mrf.mxu1  ;;  %v331_v11 = vsub.s32 4, %v5761_v54  ;;  %v4654_v12 = vld [vmem:[#allocation2 + $0x3c0] ss:$12 sps:$4 sm:$0xff]   ;;  %v4660_v14 = vld [vmem:[#allocation2 + $0x170] ss:$12 sps:$4 sm:$0xff]  }
 0x15d   :  { %1986 = vst [vmem:[#allocation5 + $0x18] sm:$0xff] %v1978_v17  ;;  %v5797_v20 = vpack.c.bf16 %v1978_v17, %v1978_v17  ;;  %3383 = vmatpush1.bf16.msra.mxu0 %v4615_v13  ;;  %v4717_v13 = vld [vmem:[#allocation2 + $0x588] ss:$12 sps:$4 sm:$0xff]   ;;  %v335_v17 = vsub.s32 5, %v5761_v54 }
 0x15e   :  { %3384 = vmatprep.subr.bf16.mxu0 %v4620_v15  ;;  %v4724_v15 = vld [vmem:[#allocation2 + $0x574] ss:$12 sps:$4 sm:$0xff]   ;;  %v332_v18 = vrot.slane %v5769_v31, %v331_v11  ;;  %v4725_v11 = vld [vmem:[#allocation2 + $0x3f8] ss:$12 sps:$4 sm:$0xff]  }
 0x15f   :  { %3369 = vmatprep.mubr.bf16.mxu1 %v5797_v20 }
 0x160   :  { %3370 = vmatmul.mubr.bf16.vlgmr.msra.gmra.mxu1 %v5799_v53 }
 0x161   :  { %3385 = vmatpush1.bf16.msra.mxu0 %v4618_v21  ;;  %3420 = vmatpush1.bf16.msra.mxu1 %v4657_v22  ;;  %v4722_v21 = vld [vmem:[#allocation2 + $0x570] ss:$12 sps:$4 sm:$0xff]  }
 0x162   :  { %3386 = vmatprep.subr.bf16.mxu0 %v4623_v23  ;;  %3421 = vmatprep.subr.bf16.mxu1 %v4664_v24  ;;  %v4729_v22 = vld [vmem:[#allocation2 + $0x55c] ss:$12 sps:$4 sm:$0xff]   ;;  %v336_v23 = vrot.slane %v5769_v31, %v335_v17 }
 0x165   :  { %3387 = vmatpush1.bf16.msra.mxu0 %v4621_v25  ;;  %3422 = vmatpush1.bf16.msra.mxu1 %v4662_v26 }
 0x166   :  { %3388 = vmatprep.subr.bf16.mxu0 %v4626_v27  ;;  %3423 = vmatprep.subr.bf16.mxu1 %v4669_v28  ;;  %v4727_v27 = vld [vmem:[#allocation2 + $0x558] ss:$12 sps:$4 sm:$0xff]  }
 0x169   :  { %3389 = vmatpush1.bf16.msra.mxu0 %v4624_v30  ;;  %3424 = vmatpush1.bf16.msra.mxu1 %v4667_v32  ;;  %v4734_v30 = vld [vmem:[#allocation2 + $0x544] ss:$12 sps:$4 sm:$0xff]  }
 0x16a   :  { %3390 = vmatprep.subr.bf16.mxu0 %v4629_v34  ;;  %3425 = vmatprep.subr.bf16.mxu1 %v4674_v35 }
 0x16d   :  { %3391 = vmatpush1.bf16.msra.mxu0 %v4627_v36  ;;  %3426 = vmatpush1.bf16.msra.mxu1 %v4672_v37 }
 0x16e   :  { %3392 = vmatprep.subr.bf16.mxu0 %v4632_v38  ;;  %3427 = vmatprep.subr.bf16.mxu1 %v4679_v39 }
 0x171   :  { %3393 = vmatpush1.bf16.msra.mxu0 %v4630_v40  ;;  %3428 = vmatpush1.bf16.msra.mxu1 %v4677_v41  ;;  %v4732_v40 = vld [vmem:[#allocation2 + $0x540] ss:$12 sps:$4 sm:$0xff]  }
 0x172   :  { %3394 = vmatprep.subr.bf16.mxu0 %v4635_v42  ;;  %3429 = vmatprep.subr.bf16.mxu1 %v4684_v43  ;;  %v4737_v42 = vld [vmem:[#allocation2 + $0x2f0] ss:$12 sps:$4 sm:$0xff]  }
 0x175   :  { %3395 = vmatpush2.bf16.msra.mxu0 %v4633_v44  ;;  %3430 = vmatpush1.bf16.msra.mxu1 %v4682_v45 }
 0x176   :  { %3396 = vmatprep.subr.bf16.mxu0 %v4638_v46  ;;  %3431 = vmatprep.subr.bf16.mxu1 %v4689_v47  ;;  %v4661_v46 = vld [vmem:[#allocation2 + $0xb0] ss:$12 sps:$4 sm:$0xff]  }
 0x179   :  { %3397 = vmatpush2.bf16.msra.mxu0 %v4636_v48  ;;  %3432 = vmatpush1.bf16.msra.mxu1 %v4687_v49  ;;  %v4665_v48 = vld [vmem:[#allocation2 + $0x158] ss:$12 sps:$4 sm:$0xff]  }
 0x17a   :  { %3398 = vmatprep.subr.bf16.mxu0 %v4641_v50  ;;  %3433 = vmatprep.subr.bf16.mxu1 %v4694_v51  ;;  %v4666_v49 = vld [vmem:[#allocation2 + $0x98] ss:$12 sps:$4 sm:$0xff]   ;;  %v4670_v50 = vld [vmem:[#allocation2 + $0x140] ss:$12 sps:$4 sm:$0xff]  }
 0x17b   :  { %v4671_v51 = vld [vmem:[#allocation2 + $0x80] ss:$12 sps:$4 sm:$0xff]  }
 0x17d   :  { %3399 = vmatpush2.bf16.msra.mxu0 %v4639_v52  ;;  %3434 = vmatpush1.bf16.msra.mxu1 %v4692_v58  ;;  %v4675_v52 = vld [vmem:[#allocation2 + $0x128] ss:$12 sps:$4 sm:$0xff]  }
 0x17e   :  { %3400 = vmatprep.subr.bf16.mxu0 %v4644_v56  ;;  %3435 = vmatprep.subr.bf16.mxu1 %v4699_v19  ;;  %v4676_v58 = vld [vmem:[#allocation2 + $0x68] ss:$12 sps:$4 sm:$0xff]   ;;  %v4680_v56 = vld [vmem:[#allocation2 + $0x110] ss:$12 sps:$4 sm:$0xff]  }
 0x17f   :  { %v4681_v19 = vld [vmem:[#allocation2 + $0x50] ss:$12 sps:$4 sm:$0xff]  }
 0x181   :  { %3401 = vmatpush2.bf16.msra.mxu0 %v4642_v59  ;;  %3436 = vmatpush2.bf16.msra.mxu1 %v4697_v57  ;;  %v4685_v59 = vld [vmem:[#allocation2 + $0xf8] ss:$12 sps:$4 sm:$0xff]  }
 0x182   :  { %3402 = vmatprep.subr.bf16.mxu0 %v4647_v60  ;;  %3437 = vmatprep.subr.bf16.mxu1 %v4704_v62  ;;  %v4686_v57 = vld [vmem:[#allocation2 + $0x38] ss:$12 sps:$4 sm:$0xff]   ;;  %v4690_v60 = vld [vmem:[#allocation2 + $0xe0] ss:$12 sps:$4 sm:$0xff]   ;;  %v4695_v62 = vld [vmem:[#allocation2 + $0xc8] ss:$12 sps:$4 sm:$0xff]  }
 0x185   :  { %3403 = vmatpush2.bf16.msra.mxu0 %v4645_v0  ;;  %3438 = vmatpush2.bf16.msra.mxu1 %v4702_v1  ;;  %v4696_v0 = vld [vmem:[#allocation2 + $0x8] ss:$12 sps:$4 sm:$0xff]   ;;  %v4700_v1 = vld [vmem:[#allocation2 + $0x470] ss:$12 sps:$4 sm:$0xff]  }
 0x186   :  { %3404 = vmatprep.subr.bf16.mxu0 %v4650_v2  ;;  %3439 = vmatprep.subr.bf16.mxu1 %v4709_v3  ;;  %v4701_v2 = vld [vmem:[#allocation2 + $0x3b0] ss:$12 sps:$4 sm:$0xff]   ;;  %v4705_v3 = vld [vmem:[#allocation2 + $0x458] ss:$12 sps:$4 sm:$0xff]  }
 0x189   :  { %3405 = vmatpush2.bf16.msra.mxu0 %v4648_v4  ;;  %3440 = vmatpush2.bf16.msra.mxu1 %v4707_v5  ;;  %v4706_v4 = vld [vmem:[#allocation2 + $0x398] ss:$12 sps:$4 sm:$0xff]   ;;  %v4710_v5 = vld [vmem:[#allocation2 + $0x440] ss:$12 sps:$4 sm:$0xff]  }
 0x18a   :  { %3406 = vmatprep.subr.bf16.mxu0 %v4653_v6  ;;  %3441 = vmatprep.subr.bf16.mxu1 %v4714_v7  ;;  %v4711_v6 = vld [vmem:[#allocation2 + $0x380] ss:$12 sps:$4 sm:$0xff]   ;;  %v4715_v7 = vld [vmem:[#allocation2 + $0x428] ss:$12 sps:$4 sm:$0xff]  }
 0x18d   :  { %3407 = vmatpush2.bf16.msra.mxu0 %v4651_v8  ;;  %3442 = vmatpush2.bf16.msra.mxu1 %v4712_v55  ;;  %v4716_v8 = vld [vmem:[#allocation2 + $0x368] ss:$12 sps:$4 sm:$0xff]   ;;  %v4720_v55 = vld [vmem:[#allocation2 + $0x410] ss:$12 sps:$4 sm:$0xff]  }
 0x18e   :  { %3408 = vmatprep.subr.bf16.mxu0 %v4656_v9  ;;  %3443 = vmatprep.subr.bf16.mxu1 %v4719_v10  ;;  %v4721_v9 = vld [vmem:[#allocation2 + $0x350] ss:$12 sps:$4 sm:$0xff]   ;;  %v339_v10 = vsub.s32 6, %v5761_v54 }
 0x191   :  { %3409 = vmatpush2.bf16.msra.mxu0 %v4654_v12  ;;  %3444 = vmatpush2.bf16.msra.mxu1 %v4717_v13  ;;  %v340_v12 = vrot.slane %v5769_v31, %v339_v10  ;;  %v4726_v13 = vld [vmem:[#allocation2 + $0x338] ss:$12 sps:$4 sm:$0xff]   ;;  %v4768_v10 = vld [vmem:[#allocation2 + $0x488] ss:$12 sps:$4 sm:$0xff]  }
 0x192   :  { %4393 = vmatprep.subr.bf16.mxu0 %v4660_v14  ;;  %3445 = vmatprep.subr.bf16.mxu1 %v4724_v15  ;;  %v4730_v14 = vld [vmem:[#allocation2 + $0x3e0] ss:$12 sps:$4 sm:$0xff]  }
 0x194   :  { %v1845_v24 = vpop.f32.mrf.mxu0 }
 0x195   :  { %v1846_v25 = vadd.f32 %v1845_v24, %v332_v18  ;;  %3446 = vmatpush2.bf16.msra.mxu1 %v4722_v21  ;;  %v4735_v24 = vld [vmem:[#allocation2 + $0x3c8] ss:$12 sps:$4 sm:$0xff]  }
 0x196   :  { %v1886_v26 = vpop.f32.mrf.mxu1  ;;  %v1847_v28 = vpop.f32.mrf.mxu0  ;;  %3447 = vmatprep.subr.bf16.mxu1 %v4729_v22  ;;  %v4731_v22 = vld [vmem:[#allocation2 + $0x320] ss:$12 sps:$4 sm:$0xff]  }
 0x197   :  { %v1887_v32 = vadd.f32 %v1886_v26, %v1846_v25  ;;  %v1848_v34 = vadd.f32 %v1847_v28, %v336_v23 }
 0x198   :  { %v1888_v35 = vpop.f32.mrf.mxu1  ;;  %v1849_v36 = vpop.f32.mrf.mxu0 }
 0x199   :  { %v1979_v37 = vmax.f32 %v1887_v32, 0.0  ;;  %v1889_v38 = vadd.f32 %v1888_v35, %v1848_v34  ;;  %3448 = vmatpush2.bf16.msra.mxu1 %v4727_v27  ;;  %v4736_v35 = vld [vmem:[#allocation2 + $0x308] ss:$12 sps:$4 sm:$0xff]  }
 0x19a   :  { %v1890_v39 = vpop.f32.mrf.mxu1  ;;  %v1850_v41 = vpop.f32.mrf.mxu0  ;;  %3449 = vmatprep.subr.bf16.mxu1 %v4734_v30 }
 0x19b   :  { %1987 = vst [vmem:[#allocation5 + $0x20] sm:$0xff] %v1979_v37  ;;  %v1980_v43 = vmax.f32 %v1889_v38, 0.0  ;;  %v5807_v47 = vpack.c.bf16 %v1979_v37, %v1979_v37  ;;  %v4738_v39 = vld [vmem:[#allocation2 + $0x230] ss:$12 sps:$4 sm:$0xff]   ;;  %v4739_v41 = vld [vmem:[#allocation2 + $0x2d8] ss:$12 sps:$4 sm:$0xff]  }
 0x19c   :  { %v1891_v44 = vpop.f32.mrf.mxu1 }
 0x19d   :  { %1988 = vst [vmem:[#allocation5 + $0x28] sm:$0xff] %v1980_v43  ;;  %v1996_v45 = vpack.c.bf16 %v1980_v43, %v1980_v43  ;;  %3450 = vmatpush2.bf16.msra.mxu1 %v4732_v40  ;;  %v4741_v43 = vld [vmem:[#allocation2 + $0x2c0] ss:$12 sps:$4 sm:$0xff]  }
 0x19e   :  { %4415 = vmatprep.subr.bf16.mxu1 %v4737_v42  ;;  %v4740_v42 = vld [vmem:[#allocation2 + $0x218] ss:$12 sps:$4 sm:$0xff]   ;;  %v4742_v44 = vld [vmem:[#allocation2 + $0x200] ss:$12 sps:$4 sm:$0xff]  }
 0x19f   :  { %3410 = vmatprep.mubr.bf16.mxu0 %v1996_v45 }
 0x1a0   :  { %3411 = vmatmul.mubr.bf16.vlgmr.msra.gmra.mxu0 %v5807_v47 }
 0x1a1   :  { %4394 = vmatpush3.bf16.msra.mxu0 %v4661_v46  ;;  %3492 = vmatprep.mubr.bf16.mxu0 %v5783_v63  ;;  %v4691_v63 = vld [vmem:[#allocation2 + $0x20] ss:$12 sps:$4 sm:$0xff]   ;;  %v4744_v46 = vld [vmem:[#allocation2 + $0x1e8] ss:$12 sps:$4 sm:$0xff]  }
 0x1a2   :  { %4395 = vmatprep.subr.bf16.mxu0 %v4665_v48  ;;  %v4745_v48 = vld [vmem:[#allocation2 + $0x290] ss:$12 sps:$4 sm:$0xff]  }
 0x1a5   :  { %4396 = vmatpush3.bf16.msra.mxu0 %v4666_v49  ;;  %v4746_v49 = vld [vmem:[#allocation2 + $0x1d0] ss:$12 sps:$4 sm:$0xff]  }
 0x1a6   :  { %4397 = vmatprep.subr.bf16.mxu0 %v4670_v50  ;;  %v4748_v50 = vld [vmem:[#allocation2 + $0x1b8] ss:$12 sps:$4 sm:$0xff]  }
 0x1a9   :  { %4398 = vmatpush3.bf16.msra.mxu0 %v4671_v51  ;;  %v4749_v51 = vld [vmem:[#allocation2 + $0x260] ss:$12 sps:$4 sm:$0xff]  }
 0x1aa   :  { %4399 = vmatprep.subr.bf16.mxu0 %v4675_v52  ;;  %v4751_v52 = vld [vmem:[#allocation2 + $0x248] ss:$12 sps:$4 sm:$0xff]  }
 0x1ad   :  { %4400 = vmatpush3.bf16.msra.mxu0 %v4676_v58  ;;  %v4752_v58 = vld [vmem:[#allocation2 + $0x188] ss:$12 sps:$4 sm:$0xff]  }
 0x1ae   :  { %4401 = vmatprep.subr.bf16.mxu0 %v4680_v56  ;;  %v4753_v56 = vld [vmem:[#allocation2 + $0x5f0] ss:$12 sps:$4 sm:$0xff]  }
 0x1b1   :  { %4402 = vmatpush3.bf16.msra.mxu0 %v4681_v19  ;;  %v4754_v19 = vld [vmem:[#allocation2 + $0x530] ss:$12 sps:$4 sm:$0xff]  }
 0x1b2   :  { %4403 = vmatprep.subr.bf16.mxu0 %v4685_v59  ;;  %v4755_v59 = vld [vmem:[#allocation2 + $0x5d8] ss:$12 sps:$4 sm:$0xff]  }
 0x1b5   :  { %4404 = vmatpush3.bf16.msra.mxu0 %v4686_v57  ;;  %v4756_v57 = vld [vmem:[#allocation2 + $0x518] ss:$12 sps:$4 sm:$0xff]  }
 0x1b6   :  { %4405 = vmatprep.subr.bf16.mxu0 %v4690_v60  ;;  %v4757_v60 = vld [vmem:[#allocation2 + $0x5c0] ss:$12 sps:$4 sm:$0xff]  }
 0x1b9   :  { %4406 = vmatpush3.bf16.msra.mxu0 %v4691_v63  ;;  %v4758_v63 = vld [vmem:[#allocation2 + $0x500] ss:$12 sps:$4 sm:$0xff]  }
 0x1ba   :  { %4407 = vmatprep.subr.bf16.mxu0 %v4695_v62  ;;  %v4759_v62 = vld [vmem:[#allocation2 + $0x5a8] ss:$12 sps:$4 sm:$0xff]  }
 0x1bd   :  { %4408 = vmatpush3.bf16.msra.mxu0 %v4696_v0  ;;  %v4760_v0 = vld [vmem:[#allocation2 + $0x4e8] ss:$12 sps:$4 sm:$0xff]  }
 0x1be   :  { %4437 = vmatprep.subr.bf16.mxu0 %v4700_v1  ;;  %v4761_v1 = vld [vmem:[#allocation2 + $0x590] ss:$12 sps:$4 sm:$0xff]  }
 0x1c0   :  { %3493 = vmatmul.mubr.bf16.vlgmr.msra.gmra.mxu0 %v5793_v61  ;;  %v343_v61 = vsub.s32 7, %v5761_v54 }
 0x1c1   :  { %4438 = vmatpush3.bf16.msra.mxu0 %v4701_v2  ;;  %3572 = vmatprep.mubr.bf16.mxu0 %v1996_v45  ;;  %v4743_v45 = vld [vmem:[#allocation2 + $0x2a8] ss:$12 sps:$4 sm:$0xff]   ;;  %v4762_v2 = vld [vmem:[#allocation2 + $0x4d0] ss:$12 sps:$4 sm:$0xff]  }
 0x1c2   :  { %4439 = vmatprep.subr.bf16.mxu0 %v4705_v3  ;;  %v344_v15 = vrot.slane %v5769_v31, %v343_v61  ;;  %v4763_v3 = vld [vmem:[#allocation2 + $0x578] ss:$12 sps:$4 sm:$0xff]  }
 0x1c5   :  { %4440 = vmatpush3.bf16.msra.mxu0 %v4706_v4  ;;  %v4764_v4 = vld [vmem:[#allocation2 + $0x4b8] ss:$12 sps:$4 sm:$0xff]  }
 0x1c6   :  { %4441 = vmatprep.subr.bf16.mxu0 %v4710_v5 }
 0x1c9   :  { %4442 = vmatpush3.bf16.msra.mxu0 %v4711_v6  ;;  %v4766_v6 = vld [vmem:[#allocation2 + $0x4a0] ss:$12 sps:$4 sm:$0xff]  }
 0x1ca   :  { %4443 = vmatprep.subr.bf16.mxu0 %v4715_v7 }
 0x1cd   :  { %4444 = vmatpush3.bf16.msra.mxu0 %v4716_v8  ;;  %v4767_v8 = vld [vmem:[#allocation2 + $0x548] ss:$12 sps:$4 sm:$0xff]  }
 0x1ce   :  { %4445 = vmatprep.subr.bf16.mxu0 %v4720_v55  ;;  %v5825_v55 = vld [vmem:[%s5917_s4] sm:$0x7] }
 0x1cf   :  { %v2260_v61 = vrot.slane %v5825_v55, %v5764_v29 }
 0x1d1   :  { %4446 = vmatpush3.bf16.msra.mxu0 %v4721_v9 }
 0x1d2   :  { %4447 = vmatprep.subr.bf16.mxu0 %v4725_v11 }
 0x1d4   :  { %v1927_v17 = vpop.f32.mrf.mxu0 }
 0x1d5   :  { %v1928_v18 = vadd.f32 %v1927_v17, %v340_v12  ;;  %4448 = vmatpush3.bf16.msra.mxu0 %v4726_v13  ;;  %v2264_v12 = vrot.slane %v5825_v55, %v5772_v33 }
 0x1d6   :  { %v1968_v21 = vpop.f32.mrf.mxu1  ;;  %v1929_v23 = vpop.f32.mrf.mxu0  ;;  %4449 = vmatprep.subr.bf16.mxu0 %v4730_v14 }
 0x1d7   :  { %v1969_v25 = vadd.f32 %v1968_v21, %v1928_v18  ;;  %v1930_v26 = vadd.f32 %v1929_v23, %v344_v15 }
 0x1d8   :  { %v1970_v27 = vpop.f32.mrf.mxu1  ;;  %v1931_v28 = vpop.f32.mrf.mxu0 }
 0x1d9   :  { %v1981_v30 = vmax.f32 %v1969_v25, 0.0  ;;  %v1971_v32 = vadd.f32 %v1970_v27, %v1930_v26  ;;  %4450 = vmatpush3.bf16.msra.mxu0 %v4731_v22 }
 0x1da   :  { %v1972_v34 = vpop.f32.mrf.mxu1  ;;  %v1932_v36 = vpop.f32.mrf.mxu0  ;;  %4451 = vmatprep.subr.bf16.mxu0 %v4735_v24 }
 0x1db   :  { %1989 = vst [vmem:[#allocation5 + $0x30] sm:$0xff] %v1981_v30  ;;  %v1982_v31 = vmax.f32 %v1971_v32, 0.0  ;;  %v5816_v40 = vpack.c.bf16 %v1981_v30, %v1981_v30  ;;  %v4769_v32 = vld [vmem:[%s5920_s7 + $0x78] sm:$0xff]  }
 0x1dc   :  { %v1973_v37 = vpop.f32.mrf.mxu1  ;;  %v4770_v34 = vld [vmem:[%s5920_s7 + $0x38] sm:$0xff]  }
 0x1dd   :  { %1990 = vst [vmem:[#allocation5 + $0x38] sm:$0xff] %v1982_v31  ;;  %v1998_v38 = vpack.c.bf16 %v1982_v31, %v1982_v31  ;;  %4452 = vmatpush3.bf16.msra.mxu0 %v4736_v35  ;;  %v4771_v37 = vld [vmem:[%s5920_s7 + $0x70] sm:$0xff]  }
 0x1de   :  { %4481 = vmatprep.subr.bf16.mxu0 %v4769_v32 }
 0x1df   :  { %3451 = vmatprep.mubr.bf16.mxu1 %v1998_v38 }
 0x1e0   :  { %3573 = vmatmul.mubr.bf16.vlgmr.msra.gmra.mxu0 %v5807_v47  ;;  %3452 = vmatmul.mubr.bf16.vlgmr.msra.gmra.mxu1 %v5816_v40  ;;  %v4747_v47 = vld [vmem:[#allocation2 + $0x278] ss:$12 sps:$4 sm:$0xff]  }
 0x1e1   :  { %4416 = vmatpush3.bf16.msra.mxu1 %v4738_v39  ;;  %3532 = vmatprep.mubr.bf16.mxu1 %v5797_v20  ;;  %v4750_v20 = vld [vmem:[#allocation2 + $0x1a0] ss:$12 sps:$4 sm:$0xff]  }
 0x1e2   :  { %4417 = vmatprep.subr.bf16.mxu1 %v4739_v41  ;;  %4482 = vmatpush3.bf16.msra.mxu0 %v4770_v34  ;;  %v4774_v41 = vld [vmem:[%s5920_s7 + $0x28] sm:$0xff]  }
 0x1e3   :  { %4483 = vmatprep.subr.bf16.mxu0 %v4771_v37 }
 0x1e5   :  { %4418 = vmatpush3.bf16.msra.mxu1 %v4740_v42  ;;  %v4775_v42 = vld [vmem:[%s5920_s7 + $0x60] sm:$0xff]  }
 0x1e6   :  { %4419 = vmatprep.subr.bf16.mxu1 %v4741_v43  ;;  %v4776_v43 = vld [vmem:[%s5920_s7 + $0x20] sm:$0xff]  }
 0x1e9   :  { %4420 = vmatpush3.bf16.msra.mxu1 %v4742_v44  ;;  %v4777_v44 = vld [vmem:[%s5920_s7 + $0x58] sm:$0xff]  }
 0x1ea   :  { %4421 = vmatprep.subr.bf16.mxu1 %v4743_v45  ;;  %v4778_v45 = vld [vmem:[%s5920_s7 + $0x18] sm:$0xff]  }
 0x1ed   :  { %4422 = vmatpush3.bf16.msra.mxu1 %v4744_v46  ;;  %v4779_v46 = vld [vmem:[%s5920_s7 + $0x50] sm:$0xff]  }
 0x1ee   :  { %4423 = vmatprep.subr.bf16.mxu1 %v4745_v48  ;;  %v4780_v48 = vld [vmem:[%s5920_s7 + $0x10] sm:$0xff]  }
 0x1f1   :  { %4424 = vmatpush3.bf16.msra.mxu1 %v4746_v49  ;;  %v4781_v49 = vld [vmem:[%s5920_s7 + $0x48] sm:$0xff]  }
 0x1f2   :  { %4425 = vmatprep.subr.bf16.mxu1 %v4747_v47  ;;  %v4782_v47 = vld [vmem:[%s5920_s7 + $0x8] sm:$0xff]  }
 0x1f5   :  { %4426 = vmatpush3.bf16.msra.mxu1 %v4748_v50  ;;  %v4783_v50 = vld [vmem:[%s5920_s7 + $0x40] sm:$0xff]  }
 0x1f6   :  { %4427 = vmatprep.subr.bf16.mxu1 %v4749_v51  ;;  %v4784_v51 = vld [vmem:[%s5920_s7] sm:$0xff]  }
 0x1f9   :  { %4428 = vmatpush3.bf16.msra.mxu1 %v4750_v20 }
 0x1fa   :  { %4429 = vmatprep.subr.bf16.mxu1 %v4751_v52 }
 0x1fd   :  { %4430 = vmatpush3.bf16.msra.mxu1 %v4752_v58 }
 0x1fe   :  { %4459 = vmatprep.subr.bf16.mxu1 %v4753_v56 }
 0x200   :  { %3533 = vmatmul.mubr.bf16.vlgmr.msra.gmra.mxu1 %v5799_v53  ;;  %v4765_v53 = vld [vmem:[#allocation2 + $0x560] ss:$12 sps:$4 sm:$0xff]  }
 0x201   :  { %4460 = vmatpush3.bf16.msra.mxu1 %v4754_v19  ;;  %3612 = vmatprep.mubr.bf16.mxu1 %v1998_v38  ;;  %v4772_v38 = vld [vmem:[%s5920_s7 + $0x30] sm:$0xff]  }
 0x202   :  { %4461 = vmatprep.subr.bf16.mxu1 %v4755_v59  ;;  %4484 = vmatpush3.bf16.msra.mxu0 %v4772_v38 }
 0x205   :  { %4462 = vmatpush3.bf16.msra.mxu1 %v4756_v57 }
 0x206   :  { %4463 = vmatprep.subr.bf16.mxu1 %v4757_v60 }
 0x209   :  { %4464 = vmatpush3.bf16.msra.mxu1 %v4758_v63 }
 0x20a   :  { %4465 = vmatprep.subr.bf16.mxu1 %v4759_v62 }
 0x20d   :  { %4466 = vmatpush3.bf16.msra.mxu1 %v4760_v0 }
 0x20e   :  { %4467 = vmatprep.subr.bf16.mxu1 %v4761_v1 }
 0x211   :  { %4468 = vmatpush3.bf16.msra.mxu1 %v4762_v2  ;;  %v2268_v2 = vrot.slane %v5825_v55, %v323_v16 }
 0x212   :  { %4469 = vmatprep.subr.bf16.mxu1 %v4763_v3 }
 0x214   :  { %v3330_v5 = vpop.f32.mrf.mxu0 }
 0x215   :  { %4470 = vmatpush3.bf16.msra.mxu1 %v4764_v4  ;;  %v3331_v13 = vadd.f32 %v3330_v5, %v2260_v61 }
 0x216   :  { %v3332_v7 = vpop.f32.mrf.mxu0  ;;  %4471 = vmatprep.subr.bf16.mxu1 %v4765_v53 }
 0x217   :  { %v3333_v15 = vadd.f32 %v3332_v7, %v2264_v12 }
 0x218   :  { %v3334_v9 = vpop.f32.mrf.mxu0 }
 0x219   :  { %4472 = vmatpush3.bf16.msra.mxu1 %v4766_v6 }
 0x21a   :  { %v3335_v11 = vpop.f32.mrf.mxu0  ;;  %4473 = vmatprep.subr.bf16.mxu1 %v4767_v8 }
 0x21d   :  { %4474 = vmatpush3.bf16.msra.mxu1 %v4768_v10 }
 0x220   :  { %3613 = vmatmul.mubr.bf16.vlgmr.msra.gmra.mxu1 %v5816_v40  ;;  %v3371_v14 = vpop.f32.mrf.mxu1  ;;  %v4773_v40 = vld [vmem:[%s5920_s7 + $0x68] sm:$0xff]  }
 0x221   :  { %v3372_v17 = vadd.f32 %v3371_v14, %v3331_v13  ;;  %4485 = vmatprep.subr.bf16.mxu0 %v4773_v40 }
 0x222   :  { %v3373_v18 = vpop.f32.mrf.mxu1  ;;  %4486 = vmatpush3.bf16.msra.mxu0 %v4774_v41 }
 0x223   :  { %v3374_v21 = vadd.f32 %v3373_v18, %v3333_v15  ;;  %4487 = vmatprep.subr.bf16.mxu0 %v4775_v42 }
 0x224   :  { %v3375_v22 = vpop.f32.mrf.mxu1 }
 0x226   :  { %v3376_v23 = vpop.f32.mrf.mxu1  ;;  %4488 = vmatpush3.bf16.msra.mxu0 %v4776_v43 }
 0x227   :  { %4489 = vmatprep.subr.bf16.mxu0 %v4777_v44 }
 0x22a   :  { %4490 = vmatpush3.bf16.msra.mxu0 %v4778_v45 }
 0x22b   :  { %4491 = vmatprep.subr.bf16.mxu0 %v4779_v46 }
 0x22e   :  { %4492 = vmatpush3.bf16.msra.mxu0 %v4780_v48 }
 0x22f   :  { %4493 = vmatprep.subr.bf16.mxu0 %v4781_v49 }
 0x232   :  { %4494 = vmatpush3.bf16.msra.mxu0 %v4782_v47 }
 0x233   :  { %4495 = vmatprep.subr.bf16.mxu0 %v4783_v50 }
 0x236   :  { %4496 = vmatpush3.bf16.msra.mxu0 %v4784_v51 }
 0x260   :  { %v3412_v24 = vpop.f32.mrf.mxu0 }
 0x261   :  { %v3413_v20 = vadd.f32 %v3412_v24, %v3372_v17 }
 0x262   :  { %v3414_v25 = vpop.f32.mrf.mxu0 }
 0x263   :  { %v3415_v26 = vadd.f32 %v3414_v25, %v3374_v21 }
 0x264   :  { %v3416_v27 = vpop.f32.mrf.mxu0 }
 0x266   :  { %v3417_v28 = vpop.f32.mrf.mxu0 }
 0x280   :  { %v4409_v30 = vpop.f32.mrf.mxu0 }
 0x282   :  { %v4410_v35 = vpop.f32.mrf.mxu0 }
 0x283   :  { %v4411_v36 = vadd.f32 %v4410_v35, %v4409_v30 }
 0x284   :  { %v4412_v31 = vpop.f32.mrf.mxu0 }
 0x285   :  { %v3495_v5 = vadd.f32 %v4411_v36, %v2268_v2 }
 0x286   :  { %v4413_v39 = vpop.f32.mrf.mxu0 }
 0x2a0   :  { %v4453_v52 = vpop.f32.mrf.mxu0  ;;  %v3453_v58 = vpop.f32.mrf.mxu1 }
 0x2a1   :  { %v5880_v56 = vadd.f32 %v3453_v58, %v3413_v20  ;;  %v3670_v20 = vld [vmem:[%s5918_s5] sm:$0x3]  ;;  %s4882_s5 = smov [#allocation6]  }
 0x2a2   :  { %v4454_v19 = vpop.f32.mrf.mxu0  ;;  %v3455_v59 = vpop.f32.mrf.mxu1  ;;  %v3675_v58 = vrot.slane %v3670_v20, %v5764_v29 }
 0x2a3   :  { %3620 = vst [vmem:[#allocation6] sm:$0xff] %v5880_v56  ;;  %v3456_v57 = vadd.f32 %v3455_v59, %v3415_v26  ;;  %3621 = vmax.xlane.f32.xlu0 %v5880_v56  ;;  %v4455_v9 = vadd.f32 %v4454_v19, %v4453_v52  ;;  %v3684_v19 = vld [vmem:[%s5919_s6] sm:$0x3]  ;;  %s3894_s6 = sshll.u32 %s4882_s5, 4  ;;  %s3895_s6 = int_to_ptr.vmem [resolvable:$true] %s3894_s6 }
 0x2a4   :  { %v4456_v60 = vpop.f32.mrf.mxu0  ;;  %v3457_v63 = vpop.f32.mrf.mxu1  ;;  %s4813_s22 = scalar_lea.vmem %s3895_s6, 128  ;;  %p4818_p6 = scmp.lt.s32.totalorder %s3895_s6, %s3895_s6 }
 0x2a5   :  { %v3631_v1 = vrot.slane %v3456_v57, 4  ;;  %v3679_v60 = vrot.slane %v3670_v20, %v5772_v33  ;;  %p4814_p5 = scmp.ne.s32.totalorder %s3895_s6, %s4813_s22  ;;  %p4819_p7 = scmp.lt.s32.totalorder %s4813_s22, %s4813_s22 }
 0x2a6   :  { %v4457_v62 = vpop.f32.mrf.mxu0  ;;  %v3458_v0 = vpop.f32.mrf.mxu1 }
 0x2a7   :  { %v3632_v3 = vadd.f32 %v3631_v1, %v3456_v57  ;;  %v3693_v0 = vrot.slane %v3684_v19, %v5772_v33  ;;  %p4820_p8 = por %p4819_p7, %p4818_p6 }
 0x2a9   :  { %v3633_v7 = vrot.slane %v3632_v3, 2  ;;  %p4821_p9 = pnand %p4820_p8, %p4814_p5 }
 0x2ab   :  { %v3634_v12 = vadd.f32 %v3633_v7, %v3632_v3 }
 0x2ad   :  { %v3635_v13 = vrot.slane %v3634_v12, 1 }
 0x2af   :  { %v3636_v14 = vadd.f32 %v3635_v13, %v3634_v12 }
 0x2b1   :  { %v3644_v15 = vmul.f32 0.125, %v3636_v14 }
 0x2b3   :  { %v3646_v17 = vsub.f32 %v3456_v57, %v3644_v15  ;;  %v3689_v57 = vrot.slane %v3684_v19, %v5764_v29 }
 0x2b5   :  { %v3648_v18 = vmul.f32 %v3646_v17, %v3646_v17 }
 0x2b7   :  { %v3650_v54 = vrot.slane %v3648_v18, 4 }
 0x2b9   :  { %v3651_v22 = vadd.f32 %v3650_v54, %v3648_v18 }
 0x2bb   :  { %v3652_v27 = vrot.slane %v3651_v22, 2 }
 0x2bd   :  { %v3653_v32 = vadd.f32 %v3652_v27, %v3651_v22 }
 0x2bf   :  { %v3654_v36 = vrot.slane %v3653_v32, 1 }
 0x2c0   :  { %v4431_v4 = vpop.f32.mrf.mxu1 }
 0x2c1   :  { %v3655_v38 = vadd.f32 %v3654_v36, %v3653_v32 }
 0x2c2   :  { %v4432_v53 = vpop.f32.mrf.mxu1 }
 0x2c3   :  { %v4433_v6 = vadd.f32 %v4432_v53, %v4431_v4  ;;  %v3662_v41 = vmul.f32 0.125, %v3655_v38 }
 0x2c4   :  { %v4434_v8 = vpop.f32.mrf.mxu1 }
 0x2c5   :  { %v3535_v10 = vadd.f32 %v4433_v6, %v3495_v5  ;;  %v3664_v44 = vadd.f32 1e-05, %v3662_v41 }
 0x2c6   :  { %v4435_v11 = vpop.f32.mrf.mxu1 }
 0x2c7   :  { %v3575_v61 = vadd.f32 %v4455_v9, %v3535_v10  ;;  %4785 = vrsqrt.f32 %v3664_v44 }
 0x2d4   :  { %v4786_v51 = vpop.eup %4785 }
 0x2d5   :  { %v3668_v52 = vmul.f32 %v4786_v51, %v3646_v17 }
 0x2d7   :  { %v3682_v59 = vmul.f32 %v3675_v58, %v3668_v52 }
 0x2d9   :  { %v3696_v1 = vadd.f32 %v3689_v57, %v3682_v59 }
 0x2db   :  { %v3698_v4 = vmax.f32 %v3696_v1, 0.0 }
 0x2dd   :  { %v3700_v6 = vpack.c.bf16 %v3698_v4, %v3698_v4 }
 0x2e0   :  { %v4475_v21 = vpop.f32.mrf.mxu1 }
 0x2e2   :  { %v4476_v16 = vpop.f32.mrf.mxu1 }
 0x2e3   :  { %v4477_v55 = vadd.f32 %v4476_v16, %v4475_v21 }
 0x2e4   :  { %v4478_v23 = vpop.f32.mrf.mxu1 }
 0x2e5   :  { %v3615_v24 = vadd.f32 %v4477_v55, %v3575_v61 }
 0x2e6   :  { %v4479_v25 = vpop.f32.mrf.mxu1 }
 0x2e7   :  { %v3637_v26 = vrot.slane %v3615_v24, 4 }
 0x2e9   :  { %v3638_v28 = vadd.f32 %v3637_v26, %v3615_v24 }
 0x2eb   :  { %v3639_v30 = vrot.slane %v3638_v28, 2 }
 0x2ed   :  { %v3640_v34 = vadd.f32 %v3639_v30, %v3638_v28 }
 0x2ef   :  { %v3641_v35 = vrot.slane %v3640_v34, 1 }
 0x2f1   :  { %v3642_v31 = vadd.f32 %v3641_v35, %v3640_v34 }
 0x2f3   :  { %v3645_v37 = vmul.f32 0.125, %v3642_v31 }
 0x2f5   :  { %v3647_v39 = vsub.f32 %v3615_v24, %v3645_v37 }
 0x2f7   :  { %v3649_v40 = vmul.f32 %v3647_v39, %v3647_v39 }
 0x2f9   :  { %v3656_v42 = vrot.slane %v3649_v40, 4 }
 0x2fb   :  { %v3657_v43 = vadd.f32 %v3656_v42, %v3649_v40 }
 0x2fd   :  { %v3658_v45 = vrot.slane %v3657_v43, 2 }
 0x2ff   :  { %v3659_v46 = vadd.f32 %v3658_v45, %v3657_v43 }
 0x301   :  { %v3660_v48 = vrot.slane %v3659_v46, 1 }
 0x303   :  { %v3661_v49 = vadd.f32 %v3660_v48, %v3659_v46 }
 0x305   :  { %v3663_v47 = vmul.f32 0.125, %v3661_v49 }
 0x307   :  { %v3665_v50 = vadd.f32 1e-05, %v3663_v47 }
 0x309   :  { %4787 = vrsqrt.f32 %v3665_v50 }
 0x316   :  { %v4788_v63 = vpop.eup %4787 }
 0x317   :  { %v3669_v62 = vmul.f32 %v4788_v63, %v3647_v39 }
 0x319   :  { %v3683_v2 = vmul.f32 %v3679_v60, %v3669_v62 }
 0x31b   :  { %v3697_v3 = vadd.f32 %v3693_v0, %v3683_v2 }
 0x31d   :  { %v3699_v53 = vmax.f32 %v3697_v3, 0.0 }
 0x31f   :  { %v3701_v5 = vpack.c.bf16 %v3699_v53, %v3699_v53 }
 0x321   :  { %3869 = vmatprep.mubr.bf16.mxu0 %v3701_v5 }
 0x322   :  { %3870 = vmatmul.mubr.bf16.vlgmr.msra.gmra.mxu0 %v3700_v6 }
 0x32c   :  { %v3622_v7 = vpop.xlane.xlu0 %3621 }
 0x32d   :  { %v3623_v8 = vsub.f32 %v5880_v56, %v3622_v7 }
 0x32f   :  { %v3624_v9 = vmul.f32 1.442695, %v3623_v8 }
 0x331   :  { %4789 = vpow2.f32 %v3624_v9 }
 0x33e   :  { %v4790_v29 = vpop.eup %4789 }
 0x33f   :  { %3626 = vadd.xlane.f32.xlu0 %v4790_v29 }
 0x340   :  { %4824 = shalt.err (!%p4821_p9)
}
 0x341   :  { %3897 = dma.vmem_to_hbm [thread:$0]  %s3895_s6, 128, %s5923_s10, [#allocation7]  }
 0x342   :  { %s4833_s25 = scalar_lea.vmem %s3885_s21, 1024  ;;  %p4838_p11 = scmp.lt.s32.totalorder %s3885_s21, %s3885_s21 }
 0x343   :  { %p4834_p10 = scmp.ne.s32.totalorder %s3885_s21, %s4833_s25  ;;  %p4839_p12 = scmp.lt.s32.totalorder %s4833_s25, %s4833_s25 }
 0x345   :  { %p4840_p13 = por %p4839_p12, %p4838_p11 }
 0x347   :  { %p4841_p0 = pnand %p4840_p13, %p4834_p10 }
 0x349   :  { %4844 = shalt.err (!%p4841_p0)
}
 0x34a   :  { %3887 = dma.vmem_to_hbm [thread:$0]  %s3885_s21, 1024, %s5922_s9, [#allocation4]  }
 0x34b   :  { %s4884_s1 = smov [#allocation8]  }
 0x34c   :  { %s3904_s2 = sshll.u32 %s4884_s1, 4  ;;  %s3905_s2 = int_to_ptr.vmem [resolvable:$true] %s3904_s2 }
 0x34d   :  { %s4853_s10 = scalar_lea.vmem %s3905_s2, 128  ;;  %p4858_p2 = scmp.lt.s32.totalorder %s3905_s2, %s3905_s2 }
 0x34e   :  { %p4854_p1 = scmp.ne.s32.totalorder %s3905_s2, %s4853_s10  ;;  %p4859_p3 = scmp.lt.s32.totalorder %s4853_s10, %s4853_s10 }
 0x350   :  { %p4860_p4 = por %p4859_p3, %p4858_p2 }
 0x352   :  { %p4861_p5 = pnand %p4860_p4, %p4854_p1 }
 0x3c8   :  { %v3627_v33 = vpop.xlane.xlu0 %3626 }
 0x3c9   :  { %4791 = vrcp.f32 %v3627_v33 }
 0x3d6   :  { %v4792_v56 = vpop.eup %4791 }
 0x3d7   :  { %v3629_v10 = vmul.f32 %v4792_v56, %v4790_v29 }
 0x3d9   :  { %3630 = vst [vmem:[#allocation8] sm:$0xff] %v3629_v10 }
 0x3da   :  { %4864 = shalt.err (!%p4861_p5)
}
 0x3db   :  { %3907 = dma.vmem_to_hbm [thread:$0]  %s3905_s2, 128, %s5924_s11, [#allocation7]   ;;  %v4376_v61 = vld [vmem:[%s5921_s8] ss:$0 sm:$0xff] }
 0x3e2   :  { %v4497_v11 = vpop.f32.mrf.mxu0 }
 0x3e4   :  { %v4498_v12 = vpop.f32.mrf.mxu0 }
 0x3e5   :  { %v4499_v13 = vadd.f32 %v4498_v12, %v4497_v11 }
 0x3e6   :  { %v4500_v14 = vpop.f32.mrf.mxu0 }
 0x3e7   :  { %v3872_v15 = vadd.f32 %v4499_v13, %v4376_v61 }
 0x3e8   :  { %v4501_v17 = vpop.f32.mrf.mxu0 }
 0x3e9   :  { %3877 = vst [vmem:[%s5925_s12] sm:$0xff] %v3872_v15 }
 0x3ea   :  { %4875 = dma.done.wait [#allocation4], 1024  }
 0x3eb   :  { %4876 = vsyncadd [#allocation4], 4294966272 }
 0x3ec   :  { %4877 = dma.done.wait [#allocation7], 256  }
 0x3ed   :  { %4878 = vsyncadd [#allocation7], 4294967040 }
 0x3ee   :  { %3921 = vsyncpa [#allocation3], 1 }
 0x3ef   :  { %3922 = vsyncpa [#allocation4], 1 }
 0x3f0   :  { %3923 = vsyncpa [#allocation7], 1 }

</bundles_post_ra>
